<compile_context>
chip_gen: v7x
topology: tpu7x:2x2x1
jax: 0.10.0
libtpu: 0.0.40
codegen_flags: <defaults>
</compile_context>

<pallas_src>
import jax
import jax.numpy as jnp
from jax.experimental import pallas as pl
from jax.experimental.pallas import tpu as pltpu

HIDDEN = 768
IN_DIM = 2 * HIDDEN
LN_EPS = 1e-5
INV_H = 1.0 / HIDDEN


def _mip_kernel(ctx_ref, tgt_ref, w_ctx_ref, w_tgt_ref, params_ref, out_ref):
    # Packed per-channel params: row 0 = fc bias, row 1 = gamma, row 2 = beta.
    params = params_ref[...]                       # (3, 768) f32, VMEM-resident
    b = params[0:1, :]
    gamma = params[1:2, :]
    beta = params[2:3, :]

    # Single VMEM load of target; reused for matmul operand and f32 residual.
    tgt = tgt_ref[...]
    ctx = ctx_ref[...]
    tgt_f32 = tgt.astype(jnp.float32)

    # fc: two [TB,768] @ [768,768] MXU matmuls (cat order is [ctx, tgt]),
    # bf16 operands (no-op cast if inputs already bf16), f32 accumulation.
    y = jnp.dot(ctx.astype(jnp.bfloat16), w_ctx_ref[...],
                preferred_element_type=jnp.float32)
    y = y + jnp.dot(tgt.astype(jnp.bfloat16), w_tgt_ref[...],
                    preferred_element_type=jnp.float32)
    y = y + b

    # LayerNorm over last axis: fused single-pass sums, biased variance
    # (matches PyTorch), clamped >= 0 to avoid NaN from cancellation.
    s = jnp.sum(y, axis=-1, keepdims=True)
    ss = jnp.sum(y * y, axis=-1, keepdims=True)
    mean = s * INV_H
    var = jnp.maximum(ss * INV_H - mean * mean, 0.0)
    inv_std = jax.lax.rsqrt(var + LN_EPS)
    normed = (y - mean) * inv_std

    # Affine + residual (f32), single cast on the way out.
    out = normed * gamma + beta + tgt_f32
    out_ref[...] = out.astype(out_ref.dtype)


def prepare_mip_params(w_t, b, gamma, beta):
    """One-time (init-time) parameter prep — keep OUT of the per-call path.

    w_t: [1536, 768] = fc.weight.T ;  b, gamma, beta: [768].
    Returns (w_ctx_bf16 [768,768], w_tgt_bf16 [768,768], params_f32 [3,768]).
    """
    w_ctx = w_t[:HIDDEN].astype(jnp.bfloat16)   # contextual half (cat order)
    w_tgt = w_t[HIDDEN:].astype(jnp.bfloat16)   # target half
    params = jnp.stack([b, gamma, beta]).astype(jnp.float32)   # (3, 768)
    return w_ctx, w_tgt, params


def _pick_batch_tile(B, block_b):
    """Pick the batch tile: as large as allowed, but >= 2 grid steps when
    B > 64 so v7x's second TensorCore gets work."""
    tb = min(B, block_b)
    if B > 64:
        half = ((pl.cdiv(B, 2) + 7) // 8) * 8      # ~B/2 rounded to sublanes
        tb = min(tb, half)
    return max(tb, 1)


def mip_forward(target, contextual, w_ctx, w_tgt, params, *, block_b=512):
    """target, contextual: [B, 768] (f32 or bf16 — dtype passed through).
    w_ctx, w_tgt, params: from prepare_mip_params()."""
    B = target.shape[0]
    tb = _pick_batch_tile(B, block_b)
    grid = (pl.cdiv(B, tb),)

    # TODO(synk): training-mode dropout (stateful PRNG mask) not implemented;
    # eval-mode dropout is identity.

    itemsize = jnp.dtype(target.dtype).itemsize
    out_itemsize = itemsize
    cost = pl.CostEstimate(
        flops=2 * B * IN_DIM * HIDDEN,
        transcendentals=0,
        bytes_accessed=(w_ctx.size + w_tgt.size) * 2             # bf16 weights
        + (contextual.size + target.size) * itemsize
        + B * HIDDEN * out_itemsize
        + params.size * 4,
    )

    compiler_kwargs = dict(dimension_semantics=("parallel",))
    if tb > 512:
        # Cover compiler f32 intermediates (y, y^2, normed) at large tiles.
        compiler_kwargs["vmem_limit_bytes"] = 48 << 20

    out = pl.pallas_call(
        _mip_kernel,
        out_shape=jax.ShapeDtypeStruct((B, HIDDEN), target.dtype),
        grid_spec=pltpu.PrefetchScalarGridSpec(
            num_scalar_prefetch=0,
            grid=grid,
            in_specs=[
                pl.BlockSpec((tb, HIDDEN), lambda i: (i, 0)),        # contextual tile
                pl.BlockSpec((tb, HIDDEN), lambda i: (i, 0)),        # target tile
                pl.BlockSpec((HIDDEN, HIDDEN), lambda i: (0, 0),     # W_ctx resident,
                             pipeline_mode=pl.Buffered(1)),          #   single buffer
                pl.BlockSpec((HIDDEN, HIDDEN), lambda i: (0, 0),     # W_tgt resident,
                             pipeline_mode=pl.Buffered(1)),          #   single buffer
                pl.BlockSpec((3, HIDDEN), lambda i: (0, 0)),         # [b; gamma; beta]
            ],
            out_specs=pl.BlockSpec((tb, HIDDEN), lambda i: (i, 0)),
        ),
        compiler_params=pltpu.CompilerParams(**compiler_kwargs),
        cost_estimate=cost,
    )(contextual, target, w_ctx, w_tgt, params)
    return out


def _reference(target, contextual, w_t, b, gamma, beta):
    combined = jnp.concatenate([contextual, target], axis=1)
    y = combined @ w_t + b
    mean = jnp.mean(y, axis=-1, keepdims=True)
    var = jnp.mean((y - mean) ** 2, axis=-1, keepdims=True)
    normed = (y - mean) / jnp.sqrt(var + LN_EPS)
    return normed * gamma + beta + target


if __name__ == "__main__":
    key = jax.random.PRNGKey(0)
    k_t, k_c, k_w, k_b, k_g, k_be = jax.random.split(key, 6)

    B = 16  # small batch; block_b=8 below forces a 2-step (pipelined) grid
    target = jax.random.normal(k_t, (B, HIDDEN), dtype=jnp.float32)
    contextual = jax.random.normal(k_c, (B, HIDDEN), dtype=jnp.float32)

    # Deterministic nn.Linear-like init; LayerNorm gamma~1, beta~0 perturbed so
    # the affine path is exercised.
    bound = 1.0 / (IN_DIM ** 0.5)
    w_t = jax.random.uniform(k_w, (IN_DIM, HIDDEN), minval=-bound, maxval=bound,
                             dtype=jnp.float32)
    b = jax.random.uniform(k_b, (HIDDEN,), minval=-bound, maxval=bound,
                           dtype=jnp.float32)
    gamma = jnp.ones((HIDDEN,), jnp.float32) + 0.01 * jax.random.normal(k_g, (HIDDEN,))
    beta = 0.01 * jax.random.normal(k_be, (HIDDEN,))

    # One-time parameter prep (outside the per-call path).
    w_ctx, w_tgt, params = prepare_mip_params(w_t, b, gamma, beta)

    out = mip_forward(target, contextual, w_ctx, w_tgt, params, block_b=8)
    jax.block_until_ready(out)

    ref = _reference(target, contextual, w_t, b, gamma, beta)
    assert out.shape == (B, HIDDEN)
    # bf16 matmul operands (f32 accumulation) shift results slightly vs the
    # pure-f32 reference; LayerNorm output is O(1) so 3e-2 tolerance is ample.
    assert jnp.allclose(out, ref, atol=3e-2, rtol=3e-2), "mismatch vs reference"

    # Also exercise the default (single-step) tile path.
    out2 = mip_forward(target, contextual, w_ctx, w_tgt, params)
    jax.block_until_ready(out2)
    assert jnp.allclose(out2, ref, atol=3e-2, rtol=3e-2), "mismatch (default tile)"

    print("KERNEL_OK")
</pallas_src>

<mosaic_0001>
module attributes {stable_mosaic.version = 11 : i64} {
  func.func @_mip_kernel(%arg0: i32, %arg1: memref<8x768xf32, #tpu.memory_space<vmem>>, %arg2: memref<8x768xf32, #tpu.memory_space<vmem>>, %arg3: memref<768x768xbf16, #tpu.memory_space<vmem>>, %arg4: memref<768x768xbf16, #tpu.memory_space<vmem>>, %arg5: memref<3x768xf32, #tpu.memory_space<vmem>>, %arg6: memref<8x768xf32, #tpu.memory_space<vmem>>) attributes {dimension_semantics = [#tpu.dimension_semantics<parallel>], iteration_bounds = array<i64: 2>, scalar_prefetch = 0 : i64, scratch_operands = 0 : i64, tpu.core_type = #tpu.core_type<tc>, window_params = [{transform_indices = @transform_0, window_bounds = array<i64: 8, 768>}, {transform_indices = @transform_1, window_bounds = array<i64: 8, 768>}, {pipeline_mode = #tpu.pipeline_mode<synchronous>, transform_indices = @transform_2, window_bounds = array<i64: 768, 768>}, {pipeline_mode = #tpu.pipeline_mode<synchronous>, transform_indices = @transform_3, window_bounds = array<i64: 768, 768>}, {pipeline_mode = #tpu.pipeline_mode<synchronous>, transform_indices = @transform_4, window_bounds = array<i64: 3, 768>}, {transform_indices = @transform_5, window_bounds = array<i64: 8, 768>}]} {
    %c0 = arith.constant 0 : index
    %c0_0 = arith.constant 0 : index
    %0 = vector.load %arg5[%c0, %c0_0] : memref<3x768xf32, #tpu.memory_space<vmem>>, vector<3x768xf32>
    %1 = vector.extract_strided_slice %0 {offsets = [0, 0], sizes = [1, 768], strides = [1, 1]} : vector<3x768xf32> to vector<1x768xf32>
    %2 = vector.extract_strided_slice %0 {offsets = [1, 0], sizes = [1, 768], strides = [1, 1]} : vector<3x768xf32> to vector<1x768xf32>
    %3 = vector.extract_strided_slice %0 {offsets = [2, 0], sizes = [1, 768], strides = [1, 1]} : vector<3x768xf32> to vector<1x768xf32>
    %c0_1 = arith.constant 0 : index
    %c0_2 = arith.constant 0 : index
    %4 = vector.load %arg2[%c0_1, %c0_2] : memref<8x768xf32, #tpu.memory_space<vmem>>, vector<8x768xf32>
    %c0_3 = arith.constant 0 : index
    %c0_4 = arith.constant 0 : index
    %5 = vector.load %arg1[%c0_3, %c0_4] : memref<8x768xf32, #tpu.memory_space<vmem>>, vector<8x768xf32>
    %6 = arith.truncf %5 : vector<8x768xf32> to vector<8x768xbf16>
    %c0_5 = arith.constant 0 : index
    %c0_6 = arith.constant 0 : index
    %7 = vector.load %arg3[%c0_5, %c0_6] : memref<768x768xbf16, #tpu.memory_space<vmem>>, vector<768x768xbf16>
    %cst = arith.constant dense<0.000000e+00> : vector<8x768xf32>
    %8 = tpu.matmul %6, %7, %cst {dimension_numbers = #tpu.dot_dimension_numbers<[1], [0], [0], [1], [0, 0, 1, 1], [], []>} : vector<8x768xbf16>, vector<768x768xbf16>, vector<8x768xf32> -> vector<8x768xf32>
    %9 = arith.truncf %4 : vector<8x768xf32> to vector<8x768xbf16>
    %c0_7 = arith.constant 0 : index
    %c0_8 = arith.constant 0 : index
    %10 = vector.load %arg4[%c0_7, %c0_8] : memref<768x768xbf16, #tpu.memory_space<vmem>>, vector<768x768xbf16>
    %cst_9 = arith.constant dense<0.000000e+00> : vector<8x768xf32>
    %11 = tpu.matmul %9, %10, %cst_9 {dimension_numbers = #tpu.dot_dimension_numbers<[1], [0], [0], [1], [0, 0, 1, 1], [], []>} : vector<8x768xbf16>, vector<768x768xbf16>, vector<8x768xf32> -> vector<8x768xf32>
    %12 = arith.addf %8, %11 : vector<8x768xf32>
    %13 = vector.broadcast %1 : vector<1x768xf32> to vector<8x768xf32>
    %14 = arith.addf %12, %13 : vector<8x768xf32>
    %cst_10 = arith.constant dense<0.000000e+00> : vector<8xf32>
    %15 = vector.multi_reduction <add>, %14, %cst_10 [1] : vector<8x768xf32> to vector<8xf32>
    %16 = vector.shape_cast %15 : vector<8xf32> to vector<8x1xf32>
    %17 = arith.mulf %14, %14 : vector<8x768xf32>
    %cst_11 = arith.constant dense<0.000000e+00> : vector<8xf32>
    %18 = vector.multi_reduction <add>, %17, %cst_11 [1] : vector<8x768xf32> to vector<8xf32>
    %19 = vector.shape_cast %18 : vector<8xf32> to vector<8x1xf32>
    %cst_12 = arith.constant 0.00130208337 : f32
    %20 = vector.broadcast %cst_12 : f32 to vector<8x1xf32>
    %21 = arith.mulf %16, %20 : vector<8x1xf32>
    %cst_13 = arith.constant 0.00130208337 : f32
    %22 = vector.broadcast %cst_13 : f32 to vector<8x1xf32>
    %23 = arith.mulf %19, %22 : vector<8x1xf32>
    %24 = arith.mulf %21, %21 : vector<8x1xf32>
    %25 = arith.subf %23, %24 : vector<8x1xf32>
    %cst_14 = arith.constant 0.000000e+00 : f32
    %26 = vector.broadcast %cst_14 : f32 to vector<8x1xf32>
    %27 = arith.maximumf %25, %26 : vector<8x1xf32>
    %cst_15 = arith.constant 9.99999974E-6 : f32
    %28 = vector.broadcast %cst_15 : f32 to vector<8x1xf32>
    %29 = arith.addf %27, %28 : vector<8x1xf32>
    %30 = math.rsqrt %29 : vector<8x1xf32>
    %31 = vector.broadcast %21 : vector<8x1xf32> to vector<8x768xf32>
    %32 = arith.subf %14, %31 : vector<8x768xf32>
    %33 = vector.broadcast %30 : vector<8x1xf32> to vector<8x768xf32>
    %34 = arith.mulf %32, %33 : vector<8x768xf32>
    %35 = vector.broadcast %2 : vector<1x768xf32> to vector<8x768xf32>
    %36 = arith.mulf %34, %35 : vector<8x768xf32>
    %37 = vector.broadcast %3 : vector<1x768xf32> to vector<8x768xf32>
    %38 = arith.addf %36, %37 : vector<8x768xf32>
    %39 = arith.addf %38, %4 : vector<8x768xf32>
    %c0_16 = arith.constant 0 : index
    %c0_17 = arith.constant 0 : index
    %40 = vector.load %arg6[%c0_16, %c0_17] : memref<8x768xf32, #tpu.memory_space<vmem>>, vector<8x768xf32>
    tpu.vector_store %arg6[%c0_16, %c0_17], %39 {strides = array<i32>} : memref<8x768xf32, #tpu.memory_space<vmem>>, vector<8x768xf32>,
    return
  }
  func.func @transform_0(%arg0: i32) -> (i32, i32) {
    %c0_i32 = arith.constant 0 : i32
    %c0_i32_0 = arith.constant 0 : i32
    return %arg0, %c0_i32 : i32, i32
  }
  func.func @transform_1(%arg0: i32) -> (i32, i32) {
    %c0_i32 = arith.constant 0 : i32
    %c0_i32_0 = arith.constant 0 : i32
    return %arg0, %c0_i32 : i32, i32
  }
  func.func @transform_2(%arg0: i32) -> (i32, i32) {
    %c0_i32 = arith.constant 0 : i32
    %c0_i32_0 = arith.constant 0 : i32
    %c0_i32_1 = arith.constant 0 : i32
    return %c0_i32, %c0_i32_0 : i32, i32
  }
  func.func @transform_3(%arg0: i32) -> (i32, i32) {
    %c0_i32 = arith.constant 0 : i32
    %c0_i32_0 = arith.constant 0 : i32
    %c0_i32_1 = arith.constant 0 : i32
    return %c0_i32, %c0_i32_0 : i32, i32
  }
  func.func @transform_4(%arg0: i32) -> (i32, i32) {
    %c0_i32 = arith.constant 0 : i32
    %c0_i32_0 = arith.constant 0 : i32
    %c0_i32_1 = arith.constant 0 : i32
    return %c0_i32, %c0_i32_0 : i32, i32
  }
  func.func @transform_5(%arg0: i32) -> (i32, i32) {
    %c0_i32 = arith.constant 0 : i32
    %c0_i32_0 = arith.constant 0 : i32
    return %arg0, %c0_i32 : i32, i32
  }
}

</mosaic_0001>

<bundles_post_ra>
// kernel: tpu_custom_call.1
= control target key start
LH: loop header
LB: loop body
LE: loop exit
PB: predicated region body
PF: predicated region fallthrough
CT: control target
= control target key end

     0   :  { %10 = vsyncpa [#allocation3], 0  ;;  %s7233_s0 = inlined_call_operand.hbm [shape: f32[16,768], index: 0, kind: input, shape index: {}]   ;;  %s7234_s1 = inlined_call_operand.hbm [shape: f32[16,768], index: 1, kind: input, shape index: {}]   ;;  %s7235_s2 = inlined_call_operand.hbm [shape: bf16[768,768], index: 2, kind: input, shape index: {}]   ;;  %s7236_s3 = inlined_call_operand.hbm [shape: bf16[768,768], index: 3, kind: input, shape index: {}]   ;;  %s7237_s4 = inlined_call_operand.hbm [shape: f32[3,768], index: 4, kind: input, shape index: {}]   ;;  %s7238_s5 = inlined_call_operand.hbm [shape: f32[16,768], index: 5, kind: output, shape index: {}]  }
   0x1   :  { %12 = vsyncpa [#allocation3 + $0x1], 0 }
   0x2   :  { %13 = vsyncpa [#allocation6], 0 }
   0x3   :  { %15 = vsyncpa [#allocation6 + $0x1], 0 }
   0x4   :  { %16 = vsyncpa [#allocation9], 0 }
   0x5   :  { %17 = vsyncpa [#allocation4], 0 }
   0x6   :  { %19 = vsyncpa [#allocation4 + $0x1], 0  ;;  %s6726_s18 = smov 0   ;;  %s6728_s19 = smov 0  }
   0x7   :  { %s6730_s20 = smov 0   ;;  %s6732_s21 = smov 0  }
   0x8 LB: > { %s6747_s22 = sadd.s32 4294967295, %s6686_s21   ;;  %s4911_s23 = sadd.s32 4294967294, %s6686_s21   ;;  %s6686_s21 = sphi %s6732_s21, %s7265_s21   ;;  %s6682_s20 = sphi %s6730_s20, %s7264_s20   ;;  %s6678_s19 = sphi %s6728_s19, %s7263_s19   ;;  %s6674_s18 = sphi %s6726_s18, %s7262_s18  }
   0x9   : > { %p45_p0 = scmp.ne.s32.totalorder %s6678_s19, %s6674_s18  ;;  %p7239_p1 = scmp.eq.s32.totalorder %s6747_s22, 0 }
   0xa   : > { %p164_p3 = scmp.eq.s32.totalorder %s4911_s23, 1  ;;  %p4912_p5 = scmp.ge.s32.totalorder %s6686_s21, 1 }
   0xb   : > { %p6756_p4 = por %p7239_p1, %p45_p0  ;;  %p171_p7 = scmp.lt.s32.totalorder %s6686_s21, 3 }
   0xc   : > { %p6761_p6 = por %p164_p3, %p45_p0  ;;  %s6688_s27 = smov [#allocation7]  }
   0xd   : > { %s7244_s24 = scalar_select %p6756_p4, 1, 0 }
   0xe   : > { %s7245_s25 = scalar_select %p6761_p6, 1, 0 }
   0xf   : > { %p6766_p8 = pnand %p4912_p5, %p171_p7  ;;  %s183_s28 = sshll.u32 %s6688_s27, 4  ;;  %s6770_s28 = int_to_ptr.vmem [resolvable:$true] %s183_s28 }
  0x10   : > { %s6689_s30 = smov [#allocation8]   ;;  %s6690_s7 = smov [#allocation10]  }
  0x11   : > { %s7246_s26 = scalar_select %p6766_p8, 1, 0 }
  0x12   : > { %p5526_p9 = pneg %p6766_p8  ;;  %s196_s6 = sshll.u32 %s6689_s30, 4  ;;  %s6781_s6 = int_to_ptr.vmem [resolvable:$true] %s196_s6 }
  0x13   : > { %s6783_s8 = sshll.u32 %s6690_s7, 4  ;;  %s6464_s11 = scalar_lea.hbm %s7235_s2, 36864  ;;  %s211_s8 = int_to_ptr.vmem [resolvable:$true] %s6783_s8 }
  0x14   : > { %p6777_p11 = pnand %p5526_p9, %p7239_p1  ;;  %p6465_p12 = scmp.ne.s32.totalorder %s7235_s2, %s6464_s11 }
  0x15   : > { %p6471_p5 = scmp.lt.u32.totalorder %s6464_s11, %s7235_s2 }
  0x16   : > { %p6793_p13 = pneg %p6777_p11 }
  0x18   : > { %p6467_p0 = pnand %p6793_p13, %p6465_p12 }
  0x1a   : > { %p6468_p3 = pneg %p6467_p0 }
  0x1c   : > { %p6473_p7 = pnand %p6471_p5, %p6468_p3 }
  0x1e   : > { %6476 = shalt.err (!%p6473_p7)
}
  0x1f   : > { %s6477_s17 = scalar_lea.vmem %s6770_s28, 36864  ;;  %p6485_p2 = scmp.lt.s32.totalorder %s6770_s28, %s6770_s28 }
  0x20   : > { %p6478_p9 = scmp.ne.s32.totalorder %s6770_s28, %s6477_s17  ;;  %p6486_p6 = scmp.lt.s32.totalorder %s6477_s17, %s6477_s17 }
  0x22   : > { %p6480_p10 = pnand %p6478_p9, %p6793_p13  ;;  %p6487_p12 = por %p6486_p6, %p6485_p2 }
  0x24   : > { %p6481_p1 = pneg %p6480_p10 }
  0x26   : > { %p6488_p0 = pnand %p6487_p12, %p6481_p1 }
  0x28   : > { %6491 = shalt.err (!%p6488_p0)
}
  0x29   : > { %s6691_s23 = smov 384   ;;  %s6692_s27 = smov 24  }
  0x2a   : > { %5529 = dma.hbm_to_vmem [thread:$0]  (!%p6777_p11), %s7235_s2, 36864, %s6770_s28, [#allocation6], %s6691_s23, %s6691_s23, %s6692_s27  }
  0x2b   : > { %s6492_s11 = scalar_lea.hbm %s7236_s3, 36864 }
  0x2c   : > { %p6493_p2 = scmp.ne.s32.totalorder %s7236_s3, %s6492_s11  ;;  %p6499_p10 = scmp.lt.u32.totalorder %s6492_s11, %s7236_s3 }
  0x2e   : > { %p6495_p1 = pnand %p6493_p2, %p6793_p13 }
  0x30   : > { %p6496_p6 = pneg %p6495_p1 }
  0x32   : > { %p6501_p3 = pnand %p6499_p10, %p6496_p6 }
  0x34   : > { %6504 = shalt.err (!%p6501_p3)
}
  0x35   : > { %s6505_s28 = scalar_lea.vmem %s6781_s6, 36864  ;;  %p6513_p12 = scmp.lt.s32.totalorder %s6781_s6, %s6781_s6 }
  0x36   : > { %p6506_p5 = scmp.ne.s32.totalorder %s6781_s6, %s6505_s28  ;;  %p6514_p0 = scmp.lt.s32.totalorder %s6505_s28, %s6505_s28 }
  0x38   : > { %p6508_p7 = pnand %p6506_p5, %p6793_p13  ;;  %p6515_p2 = por %p6514_p0, %p6513_p12 }
  0x3a   : > { %p6509_p9 = pneg %p6508_p7 }
  0x3c   : > { %p6516_p1 = pnand %p6515_p2, %p6509_p9 }
  0x3e   : > { %6519 = shalt.err (!%p6516_p1)
}
  0x3f   : > { %5532 = dma.hbm_to_vmem [thread:$0]  (!%p6777_p11), %s7236_s3, 36864, %s6781_s6, [#allocation9], %s6691_s23, %s6691_s23, %s6692_s27  }
  0x40   : > { %s6520_s10 = scalar_lea.hbm %s7237_s4, 384 }
  0x41   : > { %p6521_p6 = scmp.ne.s32.totalorder %s7237_s4, %s6520_s10  ;;  %p6527_p5 = scmp.lt.u32.totalorder %s6520_s10, %s7237_s4 }
  0x43   : > { %p6523_p10 = pnand %p6521_p6, %p6793_p13 }
  0x45   : > { %p6524_p3 = pneg %p6523_p10 }
  0x47   : > { %p6529_p7 = pnand %p6527_p5, %p6524_p3 }
  0x49   : > { %6532 = shalt.err (!%p6529_p7)
}
  0x4a   : > { %s6533_s16 = scalar_lea.vmem %s211_s8, 384  ;;  %p6541_p2 = scmp.lt.s32.totalorder %s211_s8, %s211_s8 }
  0x4b   : > { %p6534_p9 = scmp.ne.s32.totalorder %s211_s8, %s6533_s16  ;;  %p6542_p1 = scmp.lt.s32.totalorder %s6533_s16, %s6533_s16 }
  0x4d   : > { %p6536_p12 = pnand %p6534_p9, %p6793_p13  ;;  %p6543_p4 = por %p6542_p1, %p6541_p2 }
  0x4f   : > { %p6537_p0 = pneg %p6536_p12 }
  0x51   : > { %p6544_p8 = pnand %p6543_p4, %p6537_p0 }
  0x53   : > { %6547 = shalt.err (!%p6544_p8)
}
  0x54   : > { %5535 = dma.hbm_to_vmem [thread:$0]  (!%p6777_p11), %s7237_s4, 384, %s211_s8, [#allocation9]  }
  0x55   : > { %s6857_s14 = sadd.s32 1, %s6686_s21   ;;  %s32_s27 = sadd.s32 1, %s6682_s20 }
  0x56   : > { %s29_s29 = ssub.s32 %s6686_s21, %s6857_s14  ;;  %p39_p8 = scmp.ne.s32.totalorder %s6682_s20, %s6678_s19 }
  0x57   : > { %p30_p4 = scmp.eq.s32.totalorder %s29_s29, 0  ;;  %p40_p13 = scmp.eq.s32.totalorder %s6686_s21, 0 }
  0x58   : > { %p5550_p6 = scmp.lt.s32.totalorder %s6686_s21, 2  ;;  %p7249_p3 = scmp.eq.s32.totalorder %s6747_s22, 1 }
  0x59   : > { %s6867_s28 = scalar_select %p30_p4, %s6682_s20, %s32_s27  }
  0x5a   : > { %p41_p10 = por %p40_p13, %p39_p8  ;;  %p6871_p5 = por %p7249_p3, %p39_p8 }
  0x5b   : > { %s221_s30 = sand.u32 1, %s6682_s20   ;;  %s7242_s8 = smul.u32 768, %s6686_s21 }
  0x5c   : > { %s7250_s17 = scalar_select %p6871_p5, 1, 0 }
  0x5d   : > { %s6877_s7 = smul.u32 48, %s221_s30  ;;  %s6884_s11 = scalar_lea.hbm %s7233_s0, %s7242_s8 }
  0x5e   : > { %p6886_p11 = pnand %p5550_p6, %p41_p10  ;;  %s240_s13 = sand.u32 1, %s6686_s21  }
  0x5f   : > { %s225_s15 = scalar_lea.vmem [#allocation2], %s6877_s7  ;;  %s222_s6 = scalar_lea.sflag [#allocation3], %s221_s30 }
  0x60   : > { %s233_s16 = sshll.u32 %s225_s15, 4  ;;  %s6548_s23 = scalar_lea.hbm %s6884_s11, 768  ;;  %s6892_s16 = int_to_ptr.vmem [resolvable:$true] %s233_s16 }
  0x61   : > { %p6549_p7 = scmp.ne.s32.totalorder %s6884_s11, %s6548_s23  ;;  %p6550_p9 = pneg %p6886_p11 }
  0x62   : > { %s6553_s9 = scalar_lea.hbm %s7233_s0, 1536  ;;  %p6554_p2 = scmp.lt.u32.totalorder %s6884_s11, %s7233_s0 }
  0x63   : > { %p6551_p12 = pnand %p6550_p9, %p6549_p7  ;;  %p6555_p1 = scmp.lt.u32.totalorder %s6553_s9, %s6548_s23 }
  0x64   : > { %p6557_p8 = scmp.lt.u32.totalorder %s6548_s23, %s6884_s11 }
  0x65   : > { %p6552_p0 = pneg %p6551_p12  ;;  %p6556_p4 = por %p6555_p1, %p6554_p2 }
  0x67   : > { %p6558_p13 = por %p6557_p8, %p6556_p4 }
  0x69   : > { %p6559_p6 = pnand %p6558_p13, %p6552_p0 }
  0x6b   : > { %6562 = shalt.err (!%p6559_p6)
}
  0x6c   : > { %s6563_s30 = scalar_lea.vmem %s6892_s16, 768  ;;  %s6693_s15 = smov [#allocation2]  }
  0x6d   : > { %p6564_p10 = scmp.ne.s32.totalorder %s6892_s16, %s6563_s30  ;;  %s6568_s29 = sshll.u32 %s6693_s15, 4  ;;  %s6569_s29 = int_to_ptr.vmem [resolvable:$false] %s6568_s29 }
  0x6e   : > { %s6570_s8 = scalar_lea.vmem %s6569_s29, 1536  ;;  %p6571_p12 = scmp.lt.s32.totalorder %s6892_s16, %s6569_s29 }
  0x6f   : > { %p6566_p3 = pnand %p6564_p10, %p6550_p9  ;;  %p6572_p2 = scmp.lt.s32.totalorder %s6570_s8, %s6563_s30 }
  0x71   : > { %p6567_p7 = pneg %p6566_p3  ;;  %p6573_p1 = por %p6572_p2, %p6571_p12 }
  0x73   : > { %p6574_p4 = pnand %p6573_p1, %p6567_p7 }
  0x75   : > { %6577 = shalt.err (!%p6574_p4)
}
  0x76   : > { %5539 = dma.hbm_to_vmem [thread:$0]  (!%p6886_p11), %s6884_s11, 768, %s6892_s16, %s222_s6  }
  0x77   : > { %s7252_s23 = smul.u32 768, %s6686_s21  ;;  %s244_s30 = scalar_lea.vmem [#allocation5], %s6877_s7 }
  0x78   : > { %s252_s15 = sshll.u32 %s244_s30, 4  ;;  %s241_s29 = scalar_lea.sflag [#allocation6], %s240_s13  ;;  %s253_s15 = int_to_ptr.vmem [resolvable:$true] %s252_s15 }
  0x79   : > { %s6924_s10 = scalar_lea.hbm %s7234_s1, %s7252_s23  ;;  %s6583_s6 = scalar_lea.hbm %s7234_s1, 1536 }
  0x7a   : > { %s6578_s8 = scalar_lea.hbm %s6924_s10, 768  ;;  %p6584_p6 = scmp.lt.u32.totalorder %s6924_s10, %s7234_s1 }
  0x7b   : > { %p6579_p0 = scmp.ne.s32.totalorder %s6924_s10, %s6578_s8  ;;  %p6585_p10 = scmp.lt.u32.totalorder %s6583_s6, %s6578_s8 }
  0x7c   : > { %p6587_p7 = scmp.lt.u32.totalorder %s6578_s8, %s6924_s10 }
  0x7d   : > { %p6581_p8 = pnand %p6579_p0, %p6550_p9  ;;  %p6586_p3 = por %p6585_p10, %p6584_p6 }
  0x7f   : > { %p6582_p13 = pneg %p6581_p8  ;;  %p6588_p12 = por %p6587_p7, %p6586_p3 }
  0x81   : > { %p6589_p2 = pnand %p6588_p12, %p6582_p13 }
  0x83   : > { %6592 = shalt.err (!%p6589_p2)
}
  0x84   : > { %s6593_s7 = scalar_lea.vmem %s253_s15, 768  ;;  %s6694_s13 = smov [#allocation5]  }
  0x85   : > { %p6594_p1 = scmp.ne.s32.totalorder %s253_s15, %s6593_s7  ;;  %s6598_s9 = sshll.u32 %s6694_s13, 4  ;;  %s6599_s9 = int_to_ptr.vmem [resolvable:$false] %s6598_s9 }
  0x86   : > { %s6600_s30 = scalar_lea.vmem %s6599_s9, 1536  ;;  %p6601_p8 = scmp.lt.s32.totalorder %s253_s15, %s6599_s9 }
  0x87   : > { %p6596_p4 = pnand %p6594_p1, %p6550_p9  ;;  %p6602_p5 = scmp.lt.s32.totalorder %s6600_s30, %s6593_s7 }
  0x89   : > { %p6597_p0 = pneg %p6596_p4  ;;  %p6603_p6 = por %p6602_p5, %p6601_p8 }
  0x8b   : > { %p6604_p10 = pnand %p6603_p6, %p6597_p0 }
  0x8d   : > { %6607 = shalt.err (!%p6604_p10)
}
  0x8e   : > { %5542 = dma.hbm_to_vmem [thread:$0]  (!%p6886_p11), %s6924_s10, 768, %s253_s15, %s241_s29  }
  0x8f   : > { %p7253_p13 = scmp.ne.s32.totalorder %s7246_s26, 0 }
  0x90   : > { %s6951_s8 = sand.u32 (!%p7253_p13), 1, %s6678_s19   ;;  %p7254_p5 = scmp.ne.s32.totalorder (!%p7253_p13), %s7244_s24, 0 }
  0x91   : > { %261 = sbr.rel (%p7253_p13) target bundleno = 1151 (0x47f), region = 40  ;;  %s264_s16 = scalar_lea.sflag (!%p7253_p13), [#allocation3], %s6951_s8 }
  0x92   : > { %s6954_s11 = smul.u32 (!%p7253_p13), 48, %s6951_s8 }
  0x94   : > { %s6958_s6 = scalar_lea.vmem (!%p7253_p13), [#allocation2], %s6954_s11 }
  0x98   : > { %6653 = dma.done.wait (%p7254_p5), %s264_s16, 768  }
  0x99   : > { %6655 = vsyncadd (%p7254_p5), %s264_s16, 4294966528  ;;  %s272_s26 = sand.u32 1, %s6747_s22   ;;  %s6966_s10 = scalar_lea.vmem [#allocation5], %s6954_s11 }
  0x9a   : > { %s273_s12 = scalar_lea.sflag [#allocation6], %s272_s26 }
  0x9b   : > { %6657 = dma.done.wait (%p7254_p5), %s273_s12, 768  }
  0x9c   : > { %6659 = vsyncadd (%p7254_p5), %s273_s12, 4294966528  ;;  %p7255_p11 = scmp.eq.s32.totalorder %s6747_s22, 0 }
  0x9e   : > { %6661 = dma.done.wait (%p7255_p11), [#allocation6], 36864   ;;  %p7256_p9 = pmov %p7255_p11 }
  0xa0   : > { %6663 = vsyncadd (%p7256_p9), [#allocation6], 4294930432  ;;  %p7257_p3 = pmov %p7256_p9 }
  0xa2   : > { %6665 = dma.done.wait (%p7257_p3), [#allocation9], 37248   ;;  %p7258_p7 = pmov %p7257_p3 }
  0xa3   : > { %v5592_v0 = vld [vmem:[#allocation8 + $0x4] ss:$24 sps:$4 sm:$0xff]   ;;  %v5596_v2 = vld [vmem:[#allocation8] ss:$24 sps:$4 sm:$0xff]   ;;  %v5598_v4 = vld [vmem:[#allocation8 + $0x34] ss:$24 sps:$4 sm:$0xff]  }
  0xa4   : > { %6667 = vsyncadd (%p7258_p7), [#allocation9], 4294930048  ;;  %v5594_v1 = vld [vmem:[#allocation8 + $0x304] ss:$24 sps:$4 sm:$0xff]   ;;  %2363 = vmatprep.subr.bf16.mxu0 %v5592_v0  ;;  %v5597_v3 = vld [vmem:[#allocation8 + $0x300] ss:$24 sps:$4 sm:$0xff]  }
  0xa5   : > { %2404 = vmatprep.subr.bf16.mxu1 %v5594_v1  ;;  %2364 = vmatpush1.bf16.msra.mxu0 %v5596_v2  ;;  %v5600_v5 = vld [vmem:[#allocation8 + $0x334] ss:$24 sps:$4 sm:$0xff]   ;;  %v5602_v6 = vld [vmem:[#allocation8 + $0x30] ss:$24 sps:$4 sm:$0xff]   ;;  %v5604_v8 = vld [vmem:[#allocation8 + $0x64] ss:$24 sps:$4 sm:$0xff]  }
  0xa6   : > { %2405 = vmatpush1.bf16.msra.mxu1 %v5597_v3  ;;  %2365 = vmatprep.subr.bf16.mxu0 %v5598_v4  ;;  %v5603_v7 = vld [vmem:[#allocation8 + $0x330] ss:$24 sps:$4 sm:$0xff]   ;;  %v5606_v9 = vld [vmem:[#allocation8 + $0x364] ss:$24 sps:$4 sm:$0xff]   ;;  %v5608_v10 = vld [vmem:[#allocation8 + $0x60] ss:$24 sps:$4 sm:$0xff]  }
  0xa7   : > { %2406 = vmatprep.subr.bf16.mxu1 %v5600_v5  ;;  %v5609_v11 = vld [vmem:[#allocation8 + $0x360] ss:$24 sps:$4 sm:$0xff]   ;;  %v5610_v12 = vld [vmem:[#allocation8 + $0x94] ss:$24 sps:$4 sm:$0xff]   ;;  %v5614_v14 = vld [vmem:[#allocation8 + $0x90] ss:$24 sps:$4 sm:$0xff]  }
  0xa8   : > { %v5612_v13 = vld [vmem:[#allocation8 + $0x394] ss:$24 sps:$4 sm:$0xff]   ;;  %v5615_v15 = vld [vmem:[#allocation8 + $0x390] ss:$24 sps:$4 sm:$0xff]   ;;  %v5616_v16 = vld [vmem:[#allocation8 + $0xc4] ss:$24 sps:$4 sm:$0xff]  }
  0xa9   : > { %2366 = vmatpush1.bf16.msra.mxu0 %v5602_v6  ;;  %v5618_v17 = vld [vmem:[#allocation8 + $0x3c4] ss:$24 sps:$4 sm:$0xff]   ;;  %v5620_v18 = vld [vmem:[#allocation8 + $0xc0] ss:$24 sps:$4 sm:$0xff]   ;;  %v5622_v20 = vld [vmem:[#allocation8 + $0xf4] ss:$24 sps:$4 sm:$0xff]  }
  0xaa   : > { %2407 = vmatpush1.bf16.msra.mxu1 %v5603_v7  ;;  %2367 = vmatprep.subr.bf16.mxu0 %v5604_v8  ;;  %v5621_v19 = vld [vmem:[#allocation8 + $0x3c0] ss:$24 sps:$4 sm:$0xff]   ;;  %v5624_v21 = vld [vmem:[#allocation8 + $0x3f4] ss:$24 sps:$4 sm:$0xff]   ;;  %v5626_v22 = vld [vmem:[#allocation8 + $0xf0] ss:$24 sps:$4 sm:$0xff]  }
  0xab   : > { %2408 = vmatprep.subr.bf16.mxu1 %v5606_v9  ;;  %v5627_v23 = vld [vmem:[#allocation8 + $0x3f0] ss:$24 sps:$4 sm:$0xff]   ;;  %v5628_v24 = vld [vmem:[#allocation8 + $0x124] ss:$24 sps:$4 sm:$0xff]   ;;  %v5632_v26 = vld [vmem:[#allocation8 + $0x120] ss:$24 sps:$4 sm:$0xff]  }
  0xac   : > { %v5630_v25 = vld [vmem:[#allocation8 + $0x424] ss:$24 sps:$4 sm:$0xff]   ;;  %v5633_v27 = vld [vmem:[#allocation8 + $0x420] ss:$24 sps:$4 sm:$0xff]   ;;  %v5634_v28 = vld [vmem:[#allocation8 + $0x154] ss:$24 sps:$4 sm:$0xff]  }
  0xad   : > { %2368 = vmatpush1.bf16.msra.mxu0 %v5608_v10  ;;  %v5636_v29 = vld [vmem:[#allocation8 + $0x454] ss:$24 sps:$4 sm:$0xff]   ;;  %v5638_v30 = vld [vmem:[#allocation8 + $0x150] ss:$24 sps:$4 sm:$0xff]   ;;  %v5640_v32 = vld [vmem:[#allocation8 + $0x184] ss:$24 sps:$4 sm:$0xff]  }
  0xae   : > { %2409 = vmatpush1.bf16.msra.mxu1 %v5609_v11  ;;  %2369 = vmatprep.subr.bf16.mxu0 %v5610_v12  ;;  %v5639_v31 = vld [vmem:[#allocation8 + $0x450] ss:$24 sps:$4 sm:$0xff]   ;;  %v5642_v33 = vld [vmem:[#allocation8 + $0x484] ss:$24 sps:$4 sm:$0xff]   ;;  %v5644_v34 = vld [vmem:[#allocation8 + $0x180] ss:$24 sps:$4 sm:$0xff]  }
  0xaf   : > { %2410 = vmatprep.subr.bf16.mxu1 %v5612_v13  ;;  %v5645_v35 = vld [vmem:[#allocation8 + $0x480] ss:$24 sps:$4 sm:$0xff]   ;;  %v5646_v36 = vld [vmem:[#allocation8 + $0x1b4] ss:$24 sps:$4 sm:$0xff]   ;;  %v5650_v38 = vld [vmem:[#allocation8 + $0x1b0] ss:$24 sps:$4 sm:$0xff]  }
  0xb0   : > { %v5648_v37 = vld [vmem:[#allocation8 + $0x4b4] ss:$24 sps:$4 sm:$0xff]   ;;  %v5651_v39 = vld [vmem:[#allocation8 + $0x4b0] ss:$24 sps:$4 sm:$0xff]   ;;  %v5652_v40 = vld [vmem:[#allocation8 + $0x1e4] ss:$24 sps:$4 sm:$0xff]  }
  0xb1   : > { %2370 = vmatpush1.bf16.msra.mxu0 %v5614_v14  ;;  %v5654_v41 = vld [vmem:[#allocation8 + $0x4e4] ss:$24 sps:$4 sm:$0xff]   ;;  %v5656_v42 = vld [vmem:[#allocation8 + $0x1e0] ss:$24 sps:$4 sm:$0xff]   ;;  %v5658_v44 = vld [vmem:[#allocation8 + $0x214] ss:$24 sps:$4 sm:$0xff]  }
  0xb2   : > { %2411 = vmatpush1.bf16.msra.mxu1 %v5615_v15  ;;  %2371 = vmatprep.subr.bf16.mxu0 %v5616_v16  ;;  %v5657_v43 = vld [vmem:[#allocation8 + $0x4e0] ss:$24 sps:$4 sm:$0xff]   ;;  %v5660_v45 = vld [vmem:[#allocation8 + $0x514] ss:$24 sps:$4 sm:$0xff]   ;;  %v5662_v47 = vld [vmem:[#allocation8 + $0x210] ss:$24 sps:$4 sm:$0xff]  }
  0xb3   : > { %2412 = vmatprep.subr.bf16.mxu1 %v5618_v17  ;;  %v324_v46 = vld [vmem:[%s6966_s10 + $0x8] sm:$0xff]  ;;  %v326_v50 = vld [vmem:[%s6966_s10 + $0x18] sm:$0xff]  ;;  %v323_v4 = vld [vmem:[%s6966_s10] sm:$0xff]  ;;  %s5507_s24 = smul.u32 768, %s6747_s22  ;;  %s319_s15 = scalar_lea.vmem [#allocation11], %s6954_s11 }
  0xb4   : > { %v5663_v48 = vld [vmem:[#allocation8 + $0x510] ss:$24 sps:$4 sm:$0xff]   ;;  %v6981_v49 = vpack.c.bf16 %v324_v46, %v324_v46  ;;  %v5664_v51 = vld [vmem:[#allocation8 + $0x244] ss:$24 sps:$4 sm:$0xff]   ;;  %v6984_v52 = vpack.c.bf16 %v326_v50, %v326_v50  ;;  %v5668_v54 = vld [vmem:[#allocation8 + $0x240] ss:$24 sps:$4 sm:$0xff]   ;;  %v6990_v8 = vpack.c.bf16 %v323_v4, %v323_v4 }
  0xb5   : > { %2372 = vmatpush1.bf16.msra.mxu0 %v5620_v18  ;;  %v5666_v53 = vld [vmem:[#allocation8 + $0x544] ss:$24 sps:$4 sm:$0xff]   ;;  %v5669_v55 = vld [vmem:[#allocation8 + $0x540] ss:$24 sps:$4 sm:$0xff]   ;;  %v5670_v56 = vld [vmem:[#allocation8 + $0x274] ss:$24 sps:$4 sm:$0xff]   ;;  %s7189_s27 = scalar_lea.hbm %s7238_s5, %s5507_s24 }
  0xb6   : > { %2413 = vmatpush1.bf16.msra.mxu1 %v5621_v19  ;;  %2373 = vmatprep.subr.bf16.mxu0 %v5622_v20  ;;  %v5672_v57 = vld [vmem:[#allocation8 + $0x574] ss:$24 sps:$4 sm:$0xff]   ;;  %v5674_v58 = vld [vmem:[#allocation8 + $0x270] ss:$24 sps:$4 sm:$0xff]   ;;  %v5676_v60 = vld [vmem:[#allocation8 + $0x2a4] ss:$24 sps:$4 sm:$0xff]  }
  0xb7   : > { %2414 = vmatprep.subr.bf16.mxu1 %v5624_v21  ;;  %2395 = vmatprep.mubr.bf16.mxu0 %v6981_v49  ;;  %v5675_v59 = vld [vmem:[#allocation8 + $0x570] ss:$24 sps:$4 sm:$0xff]   ;;  %v5678_v61 = vld [vmem:[#allocation8 + $0x5a4] ss:$24 sps:$4 sm:$0xff]   ;;  %v5680_v62 = vld [vmem:[#allocation8 + $0x2a0] ss:$24 sps:$4 sm:$0xff]  }
  0xb8   : > { %2436 = vmatprep.mubr.bf16.mxu1 %v6984_v52  ;;  %v5681_v63 = vld [vmem:[#allocation8 + $0x5a0] ss:$24 sps:$4 sm:$0xff]   ;;  %v5682_v0 = vld [vmem:[#allocation8 + $0x2d4] ss:$24 sps:$4 sm:$0xff]   ;;  %v5686_v2 = vld [vmem:[#allocation8 + $0x2d0] ss:$24 sps:$4 sm:$0xff]  }
  0xb9   : > { %2374 = vmatpush1.bf16.msra.mxu0 %v5626_v22  ;;  %v5684_v1 = vld [vmem:[#allocation8 + $0x5d4] ss:$24 sps:$4 sm:$0xff]   ;;  %v5687_v3 = vld [vmem:[#allocation8 + $0x5d0] ss:$24 sps:$4 sm:$0xff]   ;;  %v5690_v6 = vld [vmem:[#allocation8 + $0x604] ss:$24 sps:$4 sm:$0xff]  }
  0xba   : > { %2415 = vmatpush1.bf16.msra.mxu1 %v5627_v23  ;;  %2375 = vmatprep.subr.bf16.mxu0 %v5628_v24  ;;  %v325_v5 = vld [vmem:[%s6966_s10 + $0x10] sm:$0xff]  ;;  %s4790_s29 = sshll.u32 %s319_s15, 4  ;;  %s4776_s7 = scalar_lea.sflag [#allocation4], %s6951_s8  ;;  %s7191_s29 = int_to_ptr.vmem [resolvable:$true] %s4790_s29 }
  0xbb   : > { %2416 = vmatprep.subr.bf16.mxu1 %v5630_v25  ;;  %v5693_v7 = vld [vmem:[#allocation8 + $0xc] ss:$24 sps:$4 sm:$0xff]   ;;  %v6992_v9 = vpack.c.bf16 %v325_v5, %v325_v5  ;;  %v5688_v10 = vld [vmem:[#allocation8 + $0x600] ss:$24 sps:$4 sm:$0xff]   ;;  %v5699_v13 = vld [vmem:[#allocation8 + $0x3c] ss:$24 sps:$4 sm:$0xff]  }
  0xbc   : > { %v5691_v11 = vld [vmem:[#allocation8 + $0x8] ss:$24 sps:$4 sm:$0xff]   ;;  %v5696_v12 = vld [vmem:[#allocation8 + $0x634] ss:$24 sps:$4 sm:$0xff]   ;;  %v5697_v15 = vld [vmem:[#allocation8 + $0x38] ss:$24 sps:$4 sm:$0xff]  }
  0xbd   : > { %2376 = vmatpush1.bf16.msra.mxu0 %v5632_v26  ;;  %v5694_v14 = vld [vmem:[#allocation8 + $0x630] ss:$24 sps:$4 sm:$0xff]   ;;  %v5702_v16 = vld [vmem:[#allocation8 + $0x664] ss:$24 sps:$4 sm:$0xff]   ;;  %v5700_v18 = vld [vmem:[#allocation8 + $0x660] ss:$24 sps:$4 sm:$0xff]  }
  0xbe   : > { %2417 = vmatpush1.bf16.msra.mxu1 %v5633_v27  ;;  %2377 = vmatprep.subr.bf16.mxu0 %v5634_v28  ;;  %v5705_v17 = vld [vmem:[#allocation8 + $0x6c] ss:$24 sps:$4 sm:$0xff]   ;;  %v5703_v19 = vld [vmem:[#allocation8 + $0x68] ss:$24 sps:$4 sm:$0xff]   ;;  %v5711_v21 = vld [vmem:[#allocation8 + $0x9c] ss:$24 sps:$4 sm:$0xff]  }
  0xbf   : > { %2418 = vmatprep.subr.bf16.mxu1 %v5636_v29  ;;  %v5708_v20 = vld [vmem:[#allocation8 + $0x694] ss:$24 sps:$4 sm:$0xff]   ;;  %v5706_v22 = vld [vmem:[#allocation8 + $0x690] ss:$24 sps:$4 sm:$0xff]   ;;  %v5714_v24 = vld [vmem:[#allocation8 + $0x6c4] ss:$24 sps:$4 sm:$0xff]  }
  0xc0   : > { %v5709_v23 = vld [vmem:[#allocation8 + $0x98] ss:$24 sps:$4 sm:$0xff]   ;;  %v5717_v25 = vld [vmem:[#allocation8 + $0xcc] ss:$24 sps:$4 sm:$0xff]   ;;  %v5715_v27 = vld [vmem:[#allocation8 + $0xc8] ss:$24 sps:$4 sm:$0xff]  }
  0xc1   : > { %2378 = vmatpush1.bf16.msra.mxu0 %v5638_v30  ;;  %v5712_v26 = vld [vmem:[#allocation8 + $0x6c0] ss:$24 sps:$4 sm:$0xff]   ;;  %v5720_v28 = vld [vmem:[#allocation8 + $0x6f4] ss:$24 sps:$4 sm:$0xff]   ;;  %v5718_v30 = vld [vmem:[#allocation8 + $0x6f0] ss:$24 sps:$4 sm:$0xff]  }
  0xc2   : > { %2419 = vmatpush1.bf16.msra.mxu1 %v5639_v31  ;;  %2379 = vmatprep.subr.bf16.mxu0 %v5640_v32  ;;  %v5723_v29 = vld [vmem:[#allocation8 + $0xfc] ss:$24 sps:$4 sm:$0xff]   ;;  %v5721_v31 = vld [vmem:[#allocation8 + $0xf8] ss:$24 sps:$4 sm:$0xff]   ;;  %v5777_v5 = vld [vmem:[#allocation8 + $0x2ac] ss:$24 sps:$4 sm:$0xff]  }
  0xc3   : > { %2420 = vmatprep.subr.bf16.mxu1 %v5642_v33  ;;  %v5726_v32 = vld [vmem:[#allocation8 + $0x724] ss:$24 sps:$4 sm:$0xff]   ;;  %v5744_v46 = vld [vmem:[#allocation8 + $0x7b4] ss:$24 sps:$4 sm:$0xff]   ;;  %v5745_v50 = vld [vmem:[#allocation8 + $0x1b8] ss:$24 sps:$4 sm:$0xff]  }
  0xc4   : > { %v5729_v33 = vld [vmem:[#allocation8 + $0x12c] ss:$24 sps:$4 sm:$0xff]   ;;  %s6608_s13 = scalar_lea.vmem %s7191_s29, 768  ;;  %p7259_p2 = scmp.ne.s32.totalorder %s7250_s17, 0 }
  0xc5   : > { %2380 = vmatpush1.bf16.msra.mxu0 %v5644_v34  ;;  %v328_v34 = vld [vmem:[%s6966_s10 + $0x28] sm:$0xff]  ;;  %p6609_p12 = scmp.ne.s32.totalorder %s7191_s29, %s6608_s13  ;;  %s6695_s9 = smov [#allocation11]  }
  0xc6   : > { %2421 = vmatpush1.bf16.msra.mxu1 %v5645_v35  ;;  %2381 = vmatprep.subr.bf16.mxu0 %v5646_v36  ;;  %v6998_v35 = vpack.c.bf16 %v328_v34, %v328_v34  ;;  %v5724_v36 = vld [vmem:[#allocation8 + $0x720] ss:$24 sps:$4 sm:$0xff]   ;;  %v5774_v4 = vld [vmem:[#allocation8 + $0x8a4] ss:$24 sps:$4 sm:$0xff]   ;;  %s6612_s30 = sshll.u32 %s6695_s9, 4  ;;  %s6613_s30 = int_to_ptr.vmem [resolvable:$false] %s6612_s30 }
  0xc7   : > { %2422 = vmatprep.subr.bf16.mxu1 %v5648_v37  ;;  %v5727_v37 = vld [vmem:[#allocation8 + $0x128] ss:$24 sps:$4 sm:$0xff]   ;;  %p6610_p1 = pnand %p6609_p12, %p7259_p2  ;;  %s6614_s11 = scalar_lea.vmem %s6613_s30, 1536 }
  0xc8   : > { %v5808_v34 = vld [vmem:[#allocation8 + $0x3c8] ss:$24 sps:$4 sm:$0xff]   ;;  %p6615_p0 = scmp.lt.s32.totalorder %s7191_s29, %s6613_s30  ;;  %p6616_p8 = scmp.lt.s32.totalorder %s6614_s11, %s6608_s13 }
  0xc9   : > { %2382 = vmatpush1.bf16.msra.mxu0 %v5650_v38  ;;  %v5732_v38 = vld [vmem:[#allocation8 + $0x754] ss:$24 sps:$4 sm:$0xff]   ;;  %p6611_p4 = pneg %p6610_p1 }
  0xca   : > { %2423 = vmatpush1.bf16.msra.mxu1 %v5651_v39  ;;  %2383 = vmatprep.subr.bf16.mxu0 %v5652_v40  ;;  %v5735_v39 = vld [vmem:[#allocation8 + $0x15c] ss:$24 sps:$4 sm:$0xff]   ;;  %v5730_v40 = vld [vmem:[#allocation8 + $0x750] ss:$24 sps:$4 sm:$0xff]   ;;  %p6617_p6 = por %p6616_p8, %p6615_p0 }
  0xcb   : > { %2424 = vmatprep.subr.bf16.mxu1 %v5654_v41  ;;  %v5733_v41 = vld [vmem:[#allocation8 + $0x158] ss:$24 sps:$4 sm:$0xff]  }
  0xcc   : > { %p6618_p10 = pnand %p6617_p6, %p6611_p4 }
  0xcd   : > { %2384 = vmatpush1.bf16.msra.mxu0 %v5656_v42  ;;  %v5738_v42 = vld [vmem:[#allocation8 + $0x784] ss:$24 sps:$4 sm:$0xff]  }
  0xce   : > { %2425 = vmatpush1.bf16.msra.mxu1 %v5657_v43  ;;  %2385 = vmatprep.subr.bf16.mxu0 %v5658_v44  ;;  %v5741_v43 = vld [vmem:[#allocation8 + $0x18c] ss:$24 sps:$4 sm:$0xff]   ;;  %v5736_v44 = vld [vmem:[#allocation8 + $0x780] ss:$24 sps:$4 sm:$0xff]  }
  0xcf   : > { %2426 = vmatprep.subr.bf16.mxu1 %v5660_v45  ;;  %v5739_v45 = vld [vmem:[#allocation8 + $0x188] ss:$24 sps:$4 sm:$0xff]  }
  0xd1   : > { %2386 = vmatpush1.bf16.msra.mxu0 %v5662_v47  ;;  %v5747_v47 = vld [vmem:[#allocation8 + $0x1bc] ss:$24 sps:$4 sm:$0xff]  }
  0xd2   : > { %2427 = vmatpush1.bf16.msra.mxu1 %v5663_v48  ;;  %2387 = vmatprep.subr.bf16.mxu0 %v5664_v51  ;;  %v5742_v48 = vld [vmem:[#allocation8 + $0x7b0] ss:$24 sps:$4 sm:$0xff]   ;;  %v5750_v51 = vld [vmem:[#allocation8 + $0x7e4] ss:$24 sps:$4 sm:$0xff]  }
  0xd3   : > { %2428 = vmatprep.subr.bf16.mxu1 %v5666_v53  ;;  %v5753_v53 = vld [vmem:[#allocation8 + $0x1ec] ss:$24 sps:$4 sm:$0xff]  }
  0xd5   : > { %2388 = vmatpush1.bf16.msra.mxu0 %v5668_v54  ;;  %v5748_v54 = vld [vmem:[#allocation8 + $0x7e0] ss:$24 sps:$4 sm:$0xff]  }
  0xd6   : > { %2429 = vmatpush1.bf16.msra.mxu1 %v5669_v55  ;;  %2389 = vmatprep.subr.bf16.mxu0 %v5670_v56  ;;  %v5751_v55 = vld [vmem:[#allocation8 + $0x1e8] ss:$24 sps:$4 sm:$0xff]   ;;  %v5756_v56 = vld [vmem:[#allocation8 + $0x814] ss:$24 sps:$4 sm:$0xff]  }
  0xd7   : > { %2430 = vmatprep.subr.bf16.mxu1 %v5672_v57  ;;  %v5759_v57 = vld [vmem:[#allocation8 + $0x21c] ss:$24 sps:$4 sm:$0xff]  }
  0xd9   : > { %2390 = vmatpush1.bf16.msra.mxu0 %v5674_v58  ;;  %v5754_v58 = vld [vmem:[#allocation8 + $0x810] ss:$24 sps:$4 sm:$0xff]  }
  0xda   : > { %2431 = vmatpush1.bf16.msra.mxu1 %v5675_v59  ;;  %2391 = vmatprep.subr.bf16.mxu0 %v5676_v60  ;;  %v5757_v59 = vld [vmem:[#allocation8 + $0x218] ss:$24 sps:$4 sm:$0xff]   ;;  %v5762_v60 = vld [vmem:[#allocation8 + $0x844] ss:$24 sps:$4 sm:$0xff]  }
  0xdb   : > { %2432 = vmatprep.subr.bf16.mxu1 %v5678_v61  ;;  %v5765_v61 = vld [vmem:[#allocation8 + $0x24c] ss:$24 sps:$4 sm:$0xff]  }
  0xdd   : > { %2392 = vmatpush1.bf16.msra.mxu0 %v5680_v62  ;;  %v5760_v62 = vld [vmem:[#allocation8 + $0x840] ss:$24 sps:$4 sm:$0xff]  }
  0xde   : > { %2433 = vmatpush1.bf16.msra.mxu1 %v5681_v63  ;;  %2393 = vmatprep.subr.bf16.mxu0 %v5682_v0  ;;  %v5763_v63 = vld [vmem:[#allocation8 + $0x248] ss:$24 sps:$4 sm:$0xff]   ;;  %v5768_v0 = vld [vmem:[#allocation8 + $0x874] ss:$24 sps:$4 sm:$0xff]  }
  0xdf   : > { %2434 = vmatprep.subr.bf16.mxu1 %v5684_v1  ;;  %v5771_v1 = vld [vmem:[#allocation8 + $0x27c] ss:$24 sps:$4 sm:$0xff]  }
  0xe1   : > { %2394 = vmatpush1.bf16.msra.mxu0 %v5686_v2  ;;  %v5766_v2 = vld [vmem:[#allocation8 + $0x870] ss:$24 sps:$4 sm:$0xff]  }
  0xe2   : > { %2435 = vmatpush1.bf16.msra.mxu1 %v5687_v3  ;;  %2445 = vmatprep.subr.bf16.mxu0 %v5690_v6  ;;  %v5769_v3 = vld [vmem:[#allocation8 + $0x278] ss:$24 sps:$4 sm:$0xff]  }
  0xe3   : > { %2486 = vmatprep.subr.bf16.mxu1 %v5693_v7  ;;  %v5772_v6 = vld [vmem:[#allocation8 + $0x8a0] ss:$24 sps:$4 sm:$0xff]  }
  0xe4   : > { %2396 = vmatmul.mubr.bf16.vlgmr.msra.gmra.mrb[0].mxu0 %v6990_v8  ;;  %v5775_v7 = vld [vmem:[#allocation8 + $0x2a8] ss:$24 sps:$4 sm:$0xff]  }
  0xe5   : > { %2437 = vmatmul.mubr.bf16.vlgmr.msra.gmra.mrb[0].mxu1 %v6992_v9  ;;  %2446 = vmatpush1.bf16.msra.mxu0 %v5688_v10  ;;  %v5780_v10 = vld [vmem:[#allocation8 + $0x8d4] ss:$24 sps:$4 sm:$0xff]  }
  0xe6   : > { %2487 = vmatpush1.bf16.msra.mxu1 %v5691_v11  ;;  %2447 = vmatprep.subr.bf16.mxu0 %v5696_v12  ;;  %v5783_v11 = vld [vmem:[#allocation8 + $0x2dc] ss:$24 sps:$4 sm:$0xff]   ;;  %v5778_v12 = vld [vmem:[#allocation8 + $0x8d0] ss:$24 sps:$4 sm:$0xff]  }
  0xe7   : > { %2488 = vmatprep.subr.bf16.mxu1 %v5699_v13  ;;  %2518 = vmatprep.mubr.bf16.mxu1 %v6981_v49  ;;  %v5781_v13 = vld [vmem:[#allocation8 + $0x2d8] ss:$24 sps:$4 sm:$0xff]  }
  0xe8   : > { %2477 = vmatprep.mubr.bf16.mxu0 %v6998_v35 }
  0xe9   : > { %2448 = vmatpush1.bf16.msra.mxu0 %v5694_v14  ;;  %v327_v14 = vld [vmem:[%s6966_s10 + $0x20] sm:$0xff] }
  0xea   : > { %2489 = vmatpush1.bf16.msra.mxu1 %v5697_v15  ;;  %2449 = vmatprep.subr.bf16.mxu0 %v5702_v16  ;;  %v5786_v15 = vld [vmem:[#allocation8 + $0x30c] ss:$24 sps:$4 sm:$0xff]  }
  0xeb   : > { %2490 = vmatprep.subr.bf16.mxu1 %v5705_v17  ;;  %v5789_v16 = vld [vmem:[#allocation8 + $0x60c] ss:$24 sps:$4 sm:$0xff]   ;;  %v7002_v17 = vpack.c.bf16 %v327_v14, %v327_v14 }
  0xec   : > { %v5873_v14 = vld [vmem:[#allocation8 + $0x8ac] ss:$24 sps:$4 sm:$0xff]  }
  0xed   : > { %2450 = vmatpush1.bf16.msra.mxu0 %v5700_v18  ;;  %v5784_v18 = vld [vmem:[#allocation8 + $0x308] ss:$24 sps:$4 sm:$0xff]  }
  0xee   : > { %2491 = vmatpush1.bf16.msra.mxu1 %v5703_v19  ;;  %2451 = vmatprep.subr.bf16.mxu0 %v5708_v20  ;;  %v5787_v19 = vld [vmem:[#allocation8 + $0x608] ss:$24 sps:$4 sm:$0xff]   ;;  %v5792_v20 = vld [vmem:[#allocation8 + $0x33c] ss:$24 sps:$4 sm:$0xff]  }
  0xef   : > { %2492 = vmatprep.subr.bf16.mxu1 %v5711_v21  ;;  %v5795_v21 = vld [vmem:[#allocation8 + $0x63c] ss:$24 sps:$4 sm:$0xff]  }
  0xf1   : > { %2452 = vmatpush1.bf16.msra.mxu0 %v5706_v22  ;;  %v5790_v22 = vld [vmem:[#allocation8 + $0x338] ss:$24 sps:$4 sm:$0xff]  }
  0xf2   : > { %2493 = vmatpush1.bf16.msra.mxu1 %v5709_v23  ;;  %2453 = vmatprep.subr.bf16.mxu0 %v5714_v24  ;;  %v5793_v23 = vld [vmem:[#allocation8 + $0x638] ss:$24 sps:$4 sm:$0xff]   ;;  %v5798_v24 = vld [vmem:[#allocation8 + $0x36c] ss:$24 sps:$4 sm:$0xff]  }
  0xf3   : > { %2494 = vmatprep.subr.bf16.mxu1 %v5717_v25  ;;  %v5801_v25 = vld [vmem:[#allocation8 + $0x66c] ss:$24 sps:$4 sm:$0xff]  }
  0xf5   : > { %2454 = vmatpush1.bf16.msra.mxu0 %v5712_v26  ;;  %v5796_v26 = vld [vmem:[#allocation8 + $0x368] ss:$24 sps:$4 sm:$0xff]  }
  0xf6   : > { %2495 = vmatpush1.bf16.msra.mxu1 %v5715_v27  ;;  %2455 = vmatprep.subr.bf16.mxu0 %v5720_v28  ;;  %v5799_v27 = vld [vmem:[#allocation8 + $0x668] ss:$24 sps:$4 sm:$0xff]   ;;  %v5804_v28 = vld [vmem:[#allocation8 + $0x39c] ss:$24 sps:$4 sm:$0xff]  }
  0xf7   : > { %2496 = vmatprep.subr.bf16.mxu1 %v5723_v29  ;;  %v5807_v29 = vld [vmem:[#allocation8 + $0x69c] ss:$24 sps:$4 sm:$0xff]  }
  0xf9   : > { %2456 = vmatpush1.bf16.msra.mxu0 %v5718_v30  ;;  %v5802_v30 = vld [vmem:[#allocation8 + $0x398] ss:$24 sps:$4 sm:$0xff]  }
  0xfa   : > { %2497 = vmatpush1.bf16.msra.mxu1 %v5721_v31  ;;  %2457 = vmatprep.subr.bf16.mxu0 %v5726_v32  ;;  %v5805_v31 = vld [vmem:[#allocation8 + $0x698] ss:$24 sps:$4 sm:$0xff]   ;;  %v5810_v32 = vld [vmem:[#allocation8 + $0x3cc] ss:$24 sps:$4 sm:$0xff]  }
  0xfb   : > { %2498 = vmatprep.subr.bf16.mxu1 %v5729_v33  ;;  %v5813_v33 = vld [vmem:[#allocation8 + $0x6cc] ss:$24 sps:$4 sm:$0xff]  }
  0xfd   : > { %2458 = vmatpush1.bf16.msra.mxu0 %v5724_v36  ;;  %v5811_v36 = vld [vmem:[#allocation8 + $0x6c8] ss:$24 sps:$4 sm:$0xff]  }
  0xfe   : > { %2499 = vmatpush1.bf16.msra.mxu1 %v5727_v37  ;;  %2459 = vmatprep.subr.bf16.mxu0 %v5732_v38  ;;  %v5816_v37 = vld [vmem:[#allocation8 + $0x3fc] ss:$24 sps:$4 sm:$0xff]  }
  0xff   : > { %2500 = vmatprep.subr.bf16.mxu1 %v5735_v39  ;;  %v5819_v38 = vld [vmem:[#allocation8 + $0x6fc] ss:$24 sps:$4 sm:$0xff]   ;;  %v5814_v39 = vld [vmem:[#allocation8 + $0x3f8] ss:$24 sps:$4 sm:$0xff]  }
 0x101   : > { %2460 = vmatpush1.bf16.msra.mxu0 %v5730_v40  ;;  %v5817_v40 = vld [vmem:[#allocation8 + $0x6f8] ss:$24 sps:$4 sm:$0xff]  }
 0x102   : > { %2501 = vmatpush1.bf16.msra.mxu1 %v5733_v41  ;;  %2461 = vmatprep.subr.bf16.mxu0 %v5738_v42  ;;  %v5822_v41 = vld [vmem:[#allocation8 + $0x42c] ss:$24 sps:$4 sm:$0xff]  }
 0x103   : > { %2502 = vmatprep.subr.bf16.mxu1 %v5741_v43  ;;  %v5825_v42 = vld [vmem:[#allocation8 + $0x72c] ss:$24 sps:$4 sm:$0xff]   ;;  %v5820_v43 = vld [vmem:[#allocation8 + $0x428] ss:$24 sps:$4 sm:$0xff]  }
 0x105   : > { %2462 = vmatpush1.bf16.msra.mxu0 %v5736_v44  ;;  %v5823_v44 = vld [vmem:[#allocation8 + $0x728] ss:$24 sps:$4 sm:$0xff]  }
 0x106   : > { %2503 = vmatpush1.bf16.msra.mxu1 %v5739_v45  ;;  %2463 = vmatprep.subr.bf16.mxu0 %v5744_v46  ;;  %v5828_v45 = vld [vmem:[#allocation8 + $0x45c] ss:$24 sps:$4 sm:$0xff]  }
 0x107   : > { %2504 = vmatprep.subr.bf16.mxu1 %v5747_v47  ;;  %v5831_v46 = vld [vmem:[#allocation8 + $0x75c] ss:$24 sps:$4 sm:$0xff]   ;;  %v5826_v47 = vld [vmem:[#allocation8 + $0x458] ss:$24 sps:$4 sm:$0xff]  }
 0x109   : > { %2464 = vmatpush1.bf16.msra.mxu0 %v5742_v48  ;;  %v5829_v48 = vld [vmem:[#allocation8 + $0x758] ss:$24 sps:$4 sm:$0xff]  }
 0x10a   : > { %2505 = vmatpush1.bf16.msra.mxu1 %v5745_v50  ;;  %2465 = vmatprep.subr.bf16.mxu0 %v5750_v51  ;;  %v5834_v50 = vld [vmem:[#allocation8 + $0x48c] ss:$24 sps:$4 sm:$0xff]  }
 0x10b   : > { %2506 = vmatprep.subr.bf16.mxu1 %v5753_v53  ;;  %v5837_v51 = vld [vmem:[#allocation8 + $0x78c] ss:$24 sps:$4 sm:$0xff]   ;;  %v5832_v53 = vld [vmem:[#allocation8 + $0x488] ss:$24 sps:$4 sm:$0xff]  }
 0x10d   : > { %2466 = vmatpush1.bf16.msra.mxu0 %v5748_v54  ;;  %v5835_v54 = vld [vmem:[#allocation8 + $0x788] ss:$24 sps:$4 sm:$0xff]  }
 0x10e   : > { %2507 = vmatpush1.bf16.msra.mxu1 %v5751_v55  ;;  %2467 = vmatprep.subr.bf16.mxu0 %v5756_v56  ;;  %v5840_v55 = vld [vmem:[#allocation8 + $0x4bc] ss:$24 sps:$4 sm:$0xff]  }
 0x10f   : > { %2508 = vmatprep.subr.bf16.mxu1 %v5759_v57  ;;  %v5843_v56 = vld [vmem:[#allocation8 + $0x7bc] ss:$24 sps:$4 sm:$0xff]   ;;  %v5838_v57 = vld [vmem:[#allocation8 + $0x4b8] ss:$24 sps:$4 sm:$0xff]  }
 0x111   : > { %2468 = vmatpush1.bf16.msra.mxu0 %v5754_v58  ;;  %v5841_v58 = vld [vmem:[#allocation8 + $0x7b8] ss:$24 sps:$4 sm:$0xff]  }
 0x112   : > { %2509 = vmatpush1.bf16.msra.mxu1 %v5757_v59  ;;  %2469 = vmatprep.subr.bf16.mxu0 %v5762_v60  ;;  %v5846_v59 = vld [vmem:[#allocation8 + $0x4ec] ss:$24 sps:$4 sm:$0xff]  }
 0x113   : > { %2510 = vmatprep.subr.bf16.mxu1 %v5765_v61  ;;  %v5849_v60 = vld [vmem:[#allocation8 + $0x7ec] ss:$24 sps:$4 sm:$0xff]   ;;  %v5844_v61 = vld [vmem:[#allocation8 + $0x4e8] ss:$24 sps:$4 sm:$0xff]  }
 0x115   : > { %2470 = vmatpush1.bf16.msra.mxu0 %v5760_v62  ;;  %v5847_v62 = vld [vmem:[#allocation8 + $0x7e8] ss:$24 sps:$4 sm:$0xff]  }
 0x116   : > { %2511 = vmatpush1.bf16.msra.mxu1 %v5763_v63  ;;  %2471 = vmatprep.subr.bf16.mxu0 %v5768_v0  ;;  %v5852_v63 = vld [vmem:[#allocation8 + $0x51c] ss:$24 sps:$4 sm:$0xff]  }
 0x117   : > { %2512 = vmatprep.subr.bf16.mxu1 %v5771_v1  ;;  %v5855_v0 = vld [vmem:[#allocation8 + $0x81c] ss:$24 sps:$4 sm:$0xff]   ;;  %v5850_v1 = vld [vmem:[#allocation8 + $0x518] ss:$24 sps:$4 sm:$0xff]  }
 0x119   : > { %2472 = vmatpush1.bf16.msra.mxu0 %v5766_v2  ;;  %v5853_v2 = vld [vmem:[#allocation8 + $0x818] ss:$24 sps:$4 sm:$0xff]  }
 0x11a   : > { %2513 = vmatpush1.bf16.msra.mxu1 %v5769_v3  ;;  %2473 = vmatprep.subr.bf16.mxu0 %v5774_v4  ;;  %v5858_v3 = vld [vmem:[#allocation8 + $0x54c] ss:$24 sps:$4 sm:$0xff]  }
 0x11b   : > { %2514 = vmatprep.subr.bf16.mxu1 %v5777_v5  ;;  %v5861_v4 = vld [vmem:[#allocation8 + $0x84c] ss:$24 sps:$4 sm:$0xff]   ;;  %v5856_v5 = vld [vmem:[#allocation8 + $0x548] ss:$24 sps:$4 sm:$0xff]  }
 0x11d   : > { %2474 = vmatpush1.bf16.msra.mxu0 %v5772_v6  ;;  %v5859_v6 = vld [vmem:[#allocation8 + $0x848] ss:$24 sps:$4 sm:$0xff]  }
 0x11e   : > { %2515 = vmatpush1.bf16.msra.mxu1 %v5775_v7  ;;  %2475 = vmatprep.subr.bf16.mxu0 %v5780_v10  ;;  %v5864_v7 = vld [vmem:[#allocation8 + $0x57c] ss:$24 sps:$4 sm:$0xff]  }
 0x11f   : > { %2516 = vmatprep.subr.bf16.mxu1 %v5783_v11  ;;  %v5867_v10 = vld [vmem:[#allocation8 + $0x87c] ss:$24 sps:$4 sm:$0xff]   ;;  %v5862_v11 = vld [vmem:[#allocation8 + $0x578] ss:$24 sps:$4 sm:$0xff]  }
 0x121   : > { %2476 = vmatpush1.bf16.msra.mxu0 %v5778_v12  ;;  %v5865_v12 = vld [vmem:[#allocation8 + $0x878] ss:$24 sps:$4 sm:$0xff]  }
 0x122   : > { %2517 = vmatpush1.bf16.msra.mxu1 %v5781_v13  ;;  %2527 = vmatprep.subr.bf16.mxu0 %v5786_v15  ;;  %v5870_v13 = vld [vmem:[#allocation8 + $0x5ac] ss:$24 sps:$4 sm:$0xff]   ;;  %v5868_v15 = vld [vmem:[#allocation8 + $0x5a8] ss:$24 sps:$4 sm:$0xff]  }
 0x123   : > { %2568 = vmatprep.subr.bf16.mxu1 %v5789_v16  ;;  %v5871_v16 = vld [vmem:[#allocation8 + $0x8a8] ss:$24 sps:$4 sm:$0xff]  }
 0x124   : > { %2478 = vmatmul.mubr.bf16.vlgmr.msra.gmra.mrb[4].mxu0 %v7002_v17 }
 0x125   : > { %2519 = vmatmul.mubr.bf16.vlgmr.msra.gmra.mrb[4].mxu1 %v6990_v8  ;;  %2528 = vmatpush1.bf16.msra.mxu0 %v5784_v18  ;;  %v5876_v18 = vld [vmem:[#allocation8 + $0x5dc] ss:$24 sps:$4 sm:$0xff]  }
 0x126   : > { %2569 = vmatpush1.bf16.msra.mxu1 %v5787_v19  ;;  %2529 = vmatprep.subr.bf16.mxu0 %v5792_v20  ;;  %v5879_v19 = vld [vmem:[#allocation8 + $0x8dc] ss:$24 sps:$4 sm:$0xff]   ;;  %v5874_v20 = vld [vmem:[#allocation8 + $0x5d8] ss:$24 sps:$4 sm:$0xff]  }
 0x127   : > { %2570 = vmatprep.subr.bf16.mxu1 %v5795_v21  ;;  %2559 = vmatprep.mubr.bf16.mxu0 %v6984_v52  ;;  %v5877_v21 = vld [vmem:[#allocation8 + $0x8d8] ss:$24 sps:$4 sm:$0xff]  }
 0x128   : > { %2600 = vmatprep.mubr.bf16.mxu1 %v6998_v35 }
 0x129   : > { %2530 = vmatpush1.bf16.msra.mxu0 %v5790_v22  ;;  %v5882_v22 = vld [vmem:[#allocation8 + $0x14] ss:$24 sps:$4 sm:$0xff]  }
 0x12a   : > { %2571 = vmatpush1.bf16.msra.mxu1 %v5793_v23  ;;  %2531 = vmatprep.subr.bf16.mxu0 %v5798_v24  ;;  %v5885_v23 = vld [vmem:[#allocation8 + $0x314] ss:$24 sps:$4 sm:$0xff]   ;;  %v5880_v24 = vld [vmem:[#allocation8 + $0x10] ss:$24 sps:$4 sm:$0xff]  }
 0x12b   : > { %2572 = vmatprep.subr.bf16.mxu1 %v5801_v25  ;;  %v5883_v25 = vld [vmem:[#allocation8 + $0x310] ss:$24 sps:$4 sm:$0xff]  }
 0x12d   : > { %2532 = vmatpush1.bf16.msra.mxu0 %v5796_v26  ;;  %v5888_v26 = vld [vmem:[#allocation8 + $0x44] ss:$24 sps:$4 sm:$0xff]  }
 0x12e   : > { %2573 = vmatpush1.bf16.msra.mxu1 %v5799_v27  ;;  %2533 = vmatprep.subr.bf16.mxu0 %v5804_v28  ;;  %v5891_v27 = vld [vmem:[#allocation8 + $0x344] ss:$24 sps:$4 sm:$0xff]   ;;  %v5886_v28 = vld [vmem:[#allocation8 + $0x40] ss:$24 sps:$4 sm:$0xff]  }
 0x12f   : > { %2574 = vmatprep.subr.bf16.mxu1 %v5807_v29  ;;  %v5889_v29 = vld [vmem:[#allocation8 + $0x340] ss:$24 sps:$4 sm:$0xff]  }
 0x131   : > { %2534 = vmatpush1.bf16.msra.mxu0 %v5802_v30  ;;  %v5894_v30 = vld [vmem:[#allocation8 + $0x74] ss:$24 sps:$4 sm:$0xff]  }
 0x132   : > { %2575 = vmatpush1.bf16.msra.mxu1 %v5805_v31  ;;  %2535 = vmatprep.subr.bf16.mxu0 %v5810_v32  ;;  %v5897_v31 = vld [vmem:[#allocation8 + $0x374] ss:$24 sps:$4 sm:$0xff]   ;;  %v5892_v32 = vld [vmem:[#allocation8 + $0x70] ss:$24 sps:$4 sm:$0xff]  }
 0x133   : > { %2576 = vmatprep.subr.bf16.mxu1 %v5813_v33  ;;  %v5895_v33 = vld [vmem:[#allocation8 + $0x370] ss:$24 sps:$4 sm:$0xff]  }
 0x135   : > { %2536 = vmatpush1.bf16.msra.mxu0 %v5808_v34  ;;  %v5900_v34 = vld [vmem:[#allocation8 + $0xa4] ss:$24 sps:$4 sm:$0xff]  }
 0x136   : > { %2577 = vmatpush1.bf16.msra.mxu1 %v5811_v36  ;;  %2537 = vmatprep.subr.bf16.mxu0 %v5816_v37  ;;  %v5903_v36 = vld [vmem:[#allocation8 + $0x3a4] ss:$24 sps:$4 sm:$0xff]   ;;  %v5898_v37 = vld [vmem:[#allocation8 + $0xa0] ss:$24 sps:$4 sm:$0xff]  }
 0x137   : > { %2578 = vmatprep.subr.bf16.mxu1 %v5819_v38  ;;  %v5901_v38 = vld [vmem:[#allocation8 + $0x3a0] ss:$24 sps:$4 sm:$0xff]  }
 0x139   : > { %2538 = vmatpush1.bf16.msra.mxu0 %v5814_v39  ;;  %v5906_v39 = vld [vmem:[#allocation8 + $0xd4] ss:$24 sps:$4 sm:$0xff]  }
 0x13a   : > { %2579 = vmatpush1.bf16.msra.mxu1 %v5817_v40  ;;  %2539 = vmatprep.subr.bf16.mxu0 %v5822_v41  ;;  %v5909_v40 = vld [vmem:[#allocation8 + $0x3d4] ss:$24 sps:$4 sm:$0xff]   ;;  %v5912_v41 = vld [vmem:[#allocation8 + $0x104] ss:$24 sps:$4 sm:$0xff]  }
 0x13b   : > { %2580 = vmatprep.subr.bf16.mxu1 %v5825_v42  ;;  %v5915_v42 = vld [vmem:[#allocation8 + $0x404] ss:$24 sps:$4 sm:$0xff]  }
 0x13d   : > { %2540 = vmatpush1.bf16.msra.mxu0 %v5820_v43  ;;  %v5910_v43 = vld [vmem:[#allocation8 + $0x100] ss:$24 sps:$4 sm:$0xff]  }
 0x13e   : > { %2581 = vmatpush1.bf16.msra.mxu1 %v5823_v44  ;;  %2541 = vmatprep.subr.bf16.mxu0 %v5828_v45  ;;  %v5913_v44 = vld [vmem:[#allocation8 + $0x400] ss:$24 sps:$4 sm:$0xff]   ;;  %v5918_v45 = vld [vmem:[#allocation8 + $0x134] ss:$24 sps:$4 sm:$0xff]  }
 0x13f   : > { %2582 = vmatprep.subr.bf16.mxu1 %v5831_v46  ;;  %v5921_v46 = vld [vmem:[#allocation8 + $0x434] ss:$24 sps:$4 sm:$0xff]  }
 0x141   : > { %2542 = vmatpush1.bf16.msra.mxu0 %v5826_v47  ;;  %v5916_v47 = vld [vmem:[#allocation8 + $0x130] ss:$24 sps:$4 sm:$0xff]  }
 0x142   : > { %2583 = vmatpush1.bf16.msra.mxu1 %v5829_v48  ;;  %2543 = vmatprep.subr.bf16.mxu0 %v5834_v50  ;;  %v5919_v48 = vld [vmem:[#allocation8 + $0x430] ss:$24 sps:$4 sm:$0xff]   ;;  %v5924_v50 = vld [vmem:[#allocation8 + $0x164] ss:$24 sps:$4 sm:$0xff]  }
 0x143   : > { %2584 = vmatprep.subr.bf16.mxu1 %v5837_v51  ;;  %v5927_v51 = vld [vmem:[#allocation8 + $0x464] ss:$24 sps:$4 sm:$0xff]  }
 0x145   : > { %2544 = vmatpush1.bf16.msra.mxu0 %v5832_v53  ;;  %v5922_v53 = vld [vmem:[#allocation8 + $0x160] ss:$24 sps:$4 sm:$0xff]  }
 0x146   : > { %2585 = vmatpush1.bf16.msra.mxu1 %v5835_v54  ;;  %2545 = vmatprep.subr.bf16.mxu0 %v5840_v55  ;;  %v5925_v54 = vld [vmem:[#allocation8 + $0x460] ss:$24 sps:$4 sm:$0xff]   ;;  %v5930_v55 = vld [vmem:[#allocation8 + $0x194] ss:$24 sps:$4 sm:$0xff]  }
 0x147   : > { %2586 = vmatprep.subr.bf16.mxu1 %v5843_v56  ;;  %v5933_v56 = vld [vmem:[#allocation8 + $0x494] ss:$24 sps:$4 sm:$0xff]  }
 0x149   : > { %2546 = vmatpush1.bf16.msra.mxu0 %v5838_v57  ;;  %v5928_v57 = vld [vmem:[#allocation8 + $0x190] ss:$24 sps:$4 sm:$0xff]  }
 0x14a   : > { %2587 = vmatpush1.bf16.msra.mxu1 %v5841_v58  ;;  %2547 = vmatprep.subr.bf16.mxu0 %v5846_v59  ;;  %v5931_v58 = vld [vmem:[#allocation8 + $0x490] ss:$24 sps:$4 sm:$0xff]   ;;  %v5936_v59 = vld [vmem:[#allocation8 + $0x1c4] ss:$24 sps:$4 sm:$0xff]  }
 0x14b   : > { %2588 = vmatprep.subr.bf16.mxu1 %v5849_v60  ;;  %v5939_v60 = vld [vmem:[#allocation8 + $0x4c4] ss:$24 sps:$4 sm:$0xff]  }
 0x14d   : > { %2548 = vmatpush1.bf16.msra.mxu0 %v5844_v61  ;;  %v5934_v61 = vld [vmem:[#allocation8 + $0x1c0] ss:$24 sps:$4 sm:$0xff]  }
 0x14e   : > { %2589 = vmatpush1.bf16.msra.mxu1 %v5847_v62  ;;  %2549 = vmatprep.subr.bf16.mxu0 %v5852_v63  ;;  %v5937_v62 = vld [vmem:[#allocation8 + $0x4c0] ss:$24 sps:$4 sm:$0xff]   ;;  %v5942_v63 = vld [vmem:[#allocation8 + $0x1f4] ss:$24 sps:$4 sm:$0xff]  }
 0x14f   : > { %2590 = vmatprep.subr.bf16.mxu1 %v5855_v0  ;;  %v5945_v0 = vld [vmem:[#allocation8 + $0x4f4] ss:$24 sps:$4 sm:$0xff]  }
 0x151   : > { %2550 = vmatpush1.bf16.msra.mxu0 %v5850_v1  ;;  %v5940_v1 = vld [vmem:[#allocation8 + $0x1f0] ss:$24 sps:$4 sm:$0xff]  }
 0x152   : > { %2591 = vmatpush1.bf16.msra.mxu1 %v5853_v2  ;;  %2551 = vmatprep.subr.bf16.mxu0 %v5858_v3  ;;  %v5943_v2 = vld [vmem:[#allocation8 + $0x4f0] ss:$24 sps:$4 sm:$0xff]   ;;  %v5948_v3 = vld [vmem:[#allocation8 + $0x224] ss:$24 sps:$4 sm:$0xff]  }
 0x153   : > { %2592 = vmatprep.subr.bf16.mxu1 %v5861_v4  ;;  %v5951_v4 = vld [vmem:[#allocation8 + $0x524] ss:$24 sps:$4 sm:$0xff]  }
 0x155   : > { %2552 = vmatpush1.bf16.msra.mxu0 %v5856_v5  ;;  %v5946_v5 = vld [vmem:[#allocation8 + $0x220] ss:$24 sps:$4 sm:$0xff]  }
 0x156   : > { %2593 = vmatpush1.bf16.msra.mxu1 %v5859_v6  ;;  %2553 = vmatprep.subr.bf16.mxu0 %v5864_v7  ;;  %v5949_v6 = vld [vmem:[#allocation8 + $0x520] ss:$24 sps:$4 sm:$0xff]   ;;  %v5954_v7 = vld [vmem:[#allocation8 + $0x254] ss:$24 sps:$4 sm:$0xff]  }
 0x157   : > { %2594 = vmatprep.subr.bf16.mxu1 %v5867_v10  ;;  %v5957_v10 = vld [vmem:[#allocation8 + $0x554] ss:$24 sps:$4 sm:$0xff]  }
 0x159   : > { %2554 = vmatpush1.bf16.msra.mxu0 %v5862_v11  ;;  %v5952_v11 = vld [vmem:[#allocation8 + $0x250] ss:$24 sps:$4 sm:$0xff]  }
 0x15a   : > { %2595 = vmatpush1.bf16.msra.mxu1 %v5865_v12  ;;  %2555 = vmatprep.subr.bf16.mxu0 %v5870_v13  ;;  %v5955_v12 = vld [vmem:[#allocation8 + $0x550] ss:$24 sps:$4 sm:$0xff]   ;;  %v5960_v13 = vld [vmem:[#allocation8 + $0x284] ss:$24 sps:$4 sm:$0xff]  }
 0x15b   : > { %2596 = vmatprep.subr.bf16.mxu1 %v5873_v14  ;;  %v5963_v14 = vld [vmem:[#allocation8 + $0x584] ss:$24 sps:$4 sm:$0xff]  }
 0x15d   : > { %2556 = vmatpush1.bf16.msra.mxu0 %v5868_v15  ;;  %v5958_v15 = vld [vmem:[#allocation8 + $0x280] ss:$24 sps:$4 sm:$0xff]  }
 0x15e   : > { %2597 = vmatpush1.bf16.msra.mxu1 %v5871_v16  ;;  %2557 = vmatprep.subr.bf16.mxu0 %v5876_v18  ;;  %v5961_v16 = vld [vmem:[#allocation8 + $0x580] ss:$24 sps:$4 sm:$0xff]   ;;  %v5966_v18 = vld [vmem:[#allocation8 + $0x2b4] ss:$24 sps:$4 sm:$0xff]  }
 0x15f   : > { %2598 = vmatprep.subr.bf16.mxu1 %v5879_v19  ;;  %v5969_v19 = vld [vmem:[#allocation8 + $0x5b4] ss:$24 sps:$4 sm:$0xff]  }
 0x161   : > { %2558 = vmatpush1.bf16.msra.mxu0 %v5874_v20  ;;  %v5964_v20 = vld [vmem:[#allocation8 + $0x2b0] ss:$24 sps:$4 sm:$0xff]  }
 0x162   : > { %2599 = vmatpush1.bf16.msra.mxu1 %v5877_v21  ;;  %2609 = vmatprep.subr.bf16.mxu0 %v5882_v22  ;;  %v5967_v21 = vld [vmem:[#allocation8 + $0x5b0] ss:$24 sps:$4 sm:$0xff]   ;;  %v5972_v22 = vld [vmem:[#allocation8 + $0x2e4] ss:$24 sps:$4 sm:$0xff]  }
 0x163   : > { %2650 = vmatprep.subr.bf16.mxu1 %v5885_v23  ;;  %v5975_v23 = vld [vmem:[#allocation8 + $0x5e4] ss:$24 sps:$4 sm:$0xff]  }
 0x164   : > { %2560 = vmatmul.mubr.bf16.vlgmr.msra.gmra.mrb[8].mxu0 %v6992_v9 }
 0x165   : > { %2601 = vmatmul.mubr.bf16.vlgmr.msra.gmra.mrb[8].mxu1 %v7002_v17  ;;  %2610 = vmatpush1.bf16.msra.mxu0 %v5880_v24  ;;  %v5970_v24 = vld [vmem:[#allocation8 + $0x2e0] ss:$24 sps:$4 sm:$0xff]  }
 0x166   : > { %2651 = vmatpush1.bf16.msra.mxu1 %v5883_v25  ;;  %2611 = vmatprep.subr.bf16.mxu0 %v5888_v26  ;;  %v5973_v25 = vld [vmem:[#allocation8 + $0x5e0] ss:$24 sps:$4 sm:$0xff]   ;;  %v5978_v26 = vld [vmem:[#allocation8 + $0x614] ss:$24 sps:$4 sm:$0xff]  }
 0x167   : > { %2652 = vmatprep.subr.bf16.mxu1 %v5891_v27  ;;  %2641 = vmatprep.mubr.bf16.mxu0 %v6981_v49  ;;  %v5904_v49 = vld [vmem:[#allocation8 + $0xd0] ss:$24 sps:$4 sm:$0xff]   ;;  %v5981_v27 = vld [vmem:[#allocation7 + $0x4] ss:$24 sps:$4 sm:$0xff]  }
 0x168   : > { %2682 = vmatprep.mubr.bf16.mxu1 %v6984_v52  ;;  %v5907_v52 = vld [vmem:[#allocation8 + $0x3d0] ss:$24 sps:$4 sm:$0xff]  }
 0x169   : > { %2612 = vmatpush1.bf16.msra.mxu0 %v5886_v28  ;;  %v5976_v28 = vld [vmem:[#allocation8 + $0x610] ss:$24 sps:$4 sm:$0xff]  }
 0x16a   : > { %2653 = vmatpush1.bf16.msra.mxu1 %v5889_v29  ;;  %2613 = vmatprep.subr.bf16.mxu0 %v5894_v30  ;;  %v5979_v29 = vld [vmem:[#allocation7] ss:$24 sps:$4 sm:$0xff]  }
 0x16b   : > { %2654 = vmatprep.subr.bf16.mxu1 %v5897_v31  ;;  %v330_v30 = vld [vmem:[%s6958_s6 + $0x8] sm:$0xff] }
 0x16c   : > { %v5984_v31 = vld [vmem:[#allocation8 + $0x644] ss:$24 sps:$4 sm:$0xff]  }
 0x16d   : > { %2614 = vmatpush1.bf16.msra.mxu0 %v5892_v32  ;;  %v5987_v32 = vld [vmem:[#allocation7 + $0x34] ss:$24 sps:$4 sm:$0xff]  }
 0x16e   : > { %2655 = vmatpush1.bf16.msra.mxu1 %v5895_v33  ;;  %2615 = vmatprep.subr.bf16.mxu0 %v5900_v34  ;;  %v7013_v33 = vpack.c.bf16 %v330_v30, %v330_v30  ;;  %v5982_v34 = vld [vmem:[#allocation8 + $0x640] ss:$24 sps:$4 sm:$0xff]   ;;  %v6057_v30 = vld [vmem:[#allocation7 + $0x270] ss:$24 sps:$4 sm:$0xff]  }
 0x16f   : > { %2656 = vmatprep.subr.bf16.mxu1 %v5903_v36  ;;  %v5985_v36 = vld [vmem:[#allocation7 + $0x30] ss:$24 sps:$4 sm:$0xff]  }
 0x171   : > { %2616 = vmatpush1.bf16.msra.mxu0 %v5898_v37  ;;  %v5990_v37 = vld [vmem:[#allocation8 + $0x674] ss:$24 sps:$4 sm:$0xff]  }
 0x172   : > { %2657 = vmatpush1.bf16.msra.mxu1 %v5901_v38  ;;  %2617 = vmatprep.subr.bf16.mxu0 %v5906_v39  ;;  %v5993_v38 = vld [vmem:[#allocation7 + $0x64] ss:$24 sps:$4 sm:$0xff]   ;;  %v5988_v39 = vld [vmem:[#allocation8 + $0x670] ss:$24 sps:$4 sm:$0xff]  }
 0x173   : > { %2658 = vmatprep.subr.bf16.mxu1 %v5909_v40  ;;  %v5991_v40 = vld [vmem:[#allocation7 + $0x60] ss:$24 sps:$4 sm:$0xff]  }
 0x175   : > { %2618 = vmatpush1.bf16.msra.mxu0 %v5904_v49  ;;  %v5996_v49 = vld [vmem:[#allocation8 + $0x6a4] ss:$24 sps:$4 sm:$0xff]  }
 0x176   : > { %2659 = vmatpush1.bf16.msra.mxu1 %v5907_v52  ;;  %2619 = vmatprep.subr.bf16.mxu0 %v5912_v41  ;;  %v5997_v52 = vld [vmem:[#allocation7 + $0x90] ss:$24 sps:$4 sm:$0xff]   ;;  %v6002_v41 = vld [vmem:[#allocation8 + $0x6d4] ss:$24 sps:$4 sm:$0xff]  }
 0x177   : > { %2660 = vmatprep.subr.bf16.mxu1 %v5915_v42  ;;  %v6005_v42 = vld [vmem:[#allocation7 + $0xc4] ss:$24 sps:$4 sm:$0xff]  }
 0x179   : > { %2620 = vmatpush1.bf16.msra.mxu0 %v5910_v43  ;;  %v6003_v43 = vld [vmem:[#allocation7 + $0xc0] ss:$24 sps:$4 sm:$0xff]  }
 0x17a   : > { %2661 = vmatpush1.bf16.msra.mxu1 %v5913_v44  ;;  %2621 = vmatprep.subr.bf16.mxu0 %v5918_v45  ;;  %v6008_v44 = vld [vmem:[#allocation8 + $0x704] ss:$24 sps:$4 sm:$0xff]   ;;  %v6011_v45 = vld [vmem:[#allocation7 + $0xf4] ss:$24 sps:$4 sm:$0xff]  }
 0x17b   : > { %2662 = vmatprep.subr.bf16.mxu1 %v5921_v46  ;;  %v6006_v46 = vld [vmem:[#allocation8 + $0x700] ss:$24 sps:$4 sm:$0xff]  }
 0x17d   : > { %2622 = vmatpush1.bf16.msra.mxu0 %v5916_v47  ;;  %v6009_v47 = vld [vmem:[#allocation7 + $0xf0] ss:$24 sps:$4 sm:$0xff]  }
 0x17e   : > { %2663 = vmatpush1.bf16.msra.mxu1 %v5919_v48  ;;  %2623 = vmatprep.subr.bf16.mxu0 %v5924_v50  ;;  %v6014_v48 = vld [vmem:[#allocation8 + $0x734] ss:$24 sps:$4 sm:$0xff]   ;;  %v6017_v50 = vld [vmem:[#allocation7 + $0x124] ss:$24 sps:$4 sm:$0xff]  }
 0x17f   : > { %2664 = vmatprep.subr.bf16.mxu1 %v5927_v51 }
 0x181   : > { %2624 = vmatpush1.bf16.msra.mxu0 %v5922_v53 }
 0x182   : > { %2665 = vmatpush1.bf16.msra.mxu1 %v5925_v54  ;;  %2625 = vmatprep.subr.bf16.mxu0 %v5930_v55  ;;  %v6012_v54 = vld [vmem:[#allocation8 + $0x730] ss:$24 sps:$4 sm:$0xff]   ;;  %v6015_v55 = vld [vmem:[#allocation7 + $0x120] ss:$24 sps:$4 sm:$0xff]  }
 0x183   : > { %2666 = vmatprep.subr.bf16.mxu1 %v5933_v56 }
 0x185   : > { %2626 = vmatpush1.bf16.msra.mxu0 %v5928_v57 }
 0x186   : > { %2667 = vmatpush1.bf16.msra.mxu1 %v5931_v58  ;;  %2627 = vmatprep.subr.bf16.mxu0 %v5936_v59 }
 0x187   : > { %2668 = vmatprep.subr.bf16.mxu1 %v5939_v60 }
 0x189   : > { %2628 = vmatpush1.bf16.msra.mxu0 %v5934_v61 }
 0x18a   : > { %2669 = vmatpush1.bf16.msra.mxu1 %v5937_v62  ;;  %2629 = vmatprep.subr.bf16.mxu0 %v5942_v63 }
 0x18b   : > { %2670 = vmatprep.subr.bf16.mxu1 %v5945_v0  ;;  %v6020_v0 = vld [vmem:[#allocation8 + $0x764] ss:$24 sps:$4 sm:$0xff]  }
 0x18d   : > { %2630 = vmatpush1.bf16.msra.mxu0 %v5940_v1  ;;  %v6023_v1 = vld [vmem:[#allocation7 + $0x154] ss:$24 sps:$4 sm:$0xff]  }
 0x18e   : > { %2671 = vmatpush1.bf16.msra.mxu1 %v5943_v2  ;;  %2631 = vmatprep.subr.bf16.mxu0 %v5948_v3  ;;  %v6018_v2 = vld [vmem:[#allocation8 + $0x760] ss:$24 sps:$4 sm:$0xff]   ;;  %v6021_v3 = vld [vmem:[#allocation7 + $0x150] ss:$24 sps:$4 sm:$0xff]  }
 0x18f   : > { %2672 = vmatprep.subr.bf16.mxu1 %v5951_v4  ;;  %v6026_v4 = vld [vmem:[#allocation8 + $0x794] ss:$24 sps:$4 sm:$0xff]  }
 0x191   : > { %2632 = vmatpush1.bf16.msra.mxu0 %v5946_v5  ;;  %v6029_v5 = vld [vmem:[#allocation7 + $0x184] ss:$24 sps:$4 sm:$0xff]  }
 0x192   : > { %2673 = vmatpush1.bf16.msra.mxu1 %v5949_v6  ;;  %2633 = vmatprep.subr.bf16.mxu0 %v5954_v7  ;;  %v6024_v6 = vld [vmem:[#allocation8 + $0x790] ss:$24 sps:$4 sm:$0xff]   ;;  %v6027_v7 = vld [vmem:[#allocation7 + $0x180] ss:$24 sps:$4 sm:$0xff]  }
 0x193   : > { %2674 = vmatprep.subr.bf16.mxu1 %v5957_v10  ;;  %v6032_v10 = vld [vmem:[#allocation8 + $0x7c4] ss:$24 sps:$4 sm:$0xff]  }
 0x195   : > { %2634 = vmatpush1.bf16.msra.mxu0 %v5952_v11  ;;  %v6035_v11 = vld [vmem:[#allocation7 + $0x1b4] ss:$24 sps:$4 sm:$0xff]  }
 0x196   : > { %2675 = vmatpush1.bf16.msra.mxu1 %v5955_v12  ;;  %2635 = vmatprep.subr.bf16.mxu0 %v5960_v13  ;;  %v6030_v12 = vld [vmem:[#allocation8 + $0x7c0] ss:$24 sps:$4 sm:$0xff]   ;;  %v6033_v13 = vld [vmem:[#allocation7 + $0x1b0] ss:$24 sps:$4 sm:$0xff]  }
 0x197   : > { %2676 = vmatprep.subr.bf16.mxu1 %v5963_v14  ;;  %v6038_v14 = vld [vmem:[#allocation8 + $0x7f4] ss:$24 sps:$4 sm:$0xff]  }
 0x199   : > { %2636 = vmatpush1.bf16.msra.mxu0 %v5958_v15  ;;  %v6041_v15 = vld [vmem:[#allocation7 + $0x1e4] ss:$24 sps:$4 sm:$0xff]  }
 0x19a   : > { %2677 = vmatpush1.bf16.msra.mxu1 %v5961_v16  ;;  %2637 = vmatprep.subr.bf16.mxu0 %v5966_v18  ;;  %v6036_v16 = vld [vmem:[#allocation8 + $0x7f0] ss:$24 sps:$4 sm:$0xff]   ;;  %v6039_v18 = vld [vmem:[#allocation7 + $0x1e0] ss:$24 sps:$4 sm:$0xff]  }
 0x19b   : > { %2678 = vmatprep.subr.bf16.mxu1 %v5969_v19  ;;  %v6044_v19 = vld [vmem:[#allocation8 + $0x824] ss:$24 sps:$4 sm:$0xff]  }
 0x19d   : > { %2638 = vmatpush1.bf16.msra.mxu0 %v5964_v20  ;;  %v6047_v20 = vld [vmem:[#allocation7 + $0x214] ss:$24 sps:$4 sm:$0xff]  }
 0x19e   : > { %2679 = vmatpush1.bf16.msra.mxu1 %v5967_v21  ;;  %2639 = vmatprep.subr.bf16.mxu0 %v5972_v22  ;;  %v6042_v21 = vld [vmem:[#allocation8 + $0x820] ss:$24 sps:$4 sm:$0xff]   ;;  %v6045_v22 = vld [vmem:[#allocation7 + $0x210] ss:$24 sps:$4 sm:$0xff]  }
 0x19f   : > { %2680 = vmatprep.subr.bf16.mxu1 %v5975_v23  ;;  %v6050_v23 = vld [vmem:[#allocation8 + $0x854] ss:$24 sps:$4 sm:$0xff]  }
 0x1a1   : > { %2640 = vmatpush1.bf16.msra.mxu0 %v5970_v24  ;;  %v6053_v24 = vld [vmem:[#allocation7 + $0x244] ss:$24 sps:$4 sm:$0xff]  }
 0x1a2   : > { %2681 = vmatpush1.bf16.msra.mxu1 %v5973_v25  ;;  %2691 = vmatprep.subr.bf16.mxu0 %v5978_v26  ;;  %v6048_v25 = vld [vmem:[#allocation8 + $0x850] ss:$24 sps:$4 sm:$0xff]   ;;  %v6051_v26 = vld [vmem:[#allocation7 + $0x240] ss:$24 sps:$4 sm:$0xff]  }
 0x1a3   : > { %4172 = vmatprep.subr.bf16.mxu1 %v5981_v27  ;;  %v6056_v27 = vld [vmem:[#allocation8 + $0x884] ss:$24 sps:$4 sm:$0xff]  }
 0x1a4   : > { %2642 = vmatmul.mubr.bf16.vlgmr.msra.gmra.mrb[12].mxu0 %v6990_v8  ;;  %v5999_v8 = vld [vmem:[#allocation7 + $0x94] ss:$24 sps:$4 sm:$0xff]  }
 0x1a5   : > { %2683 = vmatmul.mubr.bf16.vlgmr.msra.gmra.mrb[12].mxu1 %v6992_v9  ;;  %2692 = vmatpush1.bf16.msra.mxu0 %v5976_v28  ;;  %v5994_v9 = vld [vmem:[#allocation8 + $0x6a0] ss:$24 sps:$4 sm:$0xff]   ;;  %v6059_v28 = vld [vmem:[#allocation7 + $0x274] ss:$24 sps:$4 sm:$0xff]  }
 0x1a6   : > { %4173 = vmatpush1.bf16.msra.mxu1 %v5979_v29  ;;  %2693 = vmatprep.subr.bf16.mxu0 %v5984_v31  ;;  %v6054_v29 = vld [vmem:[#allocation8 + $0x880] ss:$24 sps:$4 sm:$0xff]   ;;  %v6062_v31 = vld [vmem:[#allocation8 + $0x8b4] ss:$24 sps:$4 sm:$0xff]  }
 0x1a7   : > { %4174 = vmatprep.subr.bf16.mxu1 %v5987_v32  ;;  %2723 = vmatprep.mubr.bf16.mxu0 %v6998_v35  ;;  %v6000_v35 = vld [vmem:[#allocation8 + $0x6d0] ss:$24 sps:$4 sm:$0xff]   ;;  %v6065_v32 = vld [vmem:[#allocation7 + $0x2a4] ss:$24 sps:$4 sm:$0xff]  }
 0x1a8   : > { %4204 = vmatprep.mubr.bf16.mxu1 %v7013_v33 }
 0x1a9   : > { %2694 = vmatpush1.bf16.msra.mxu0 %v5982_v34  ;;  %v6060_v34 = vld [vmem:[#allocation8 + $0x8b0] ss:$24 sps:$4 sm:$0xff]  }
 0x1aa   : > { %4175 = vmatpush1.bf16.msra.mxu1 %v5985_v36  ;;  %2695 = vmatprep.subr.bf16.mxu0 %v5990_v37  ;;  %v6063_v36 = vld [vmem:[#allocation7 + $0x2a0] ss:$24 sps:$4 sm:$0xff]   ;;  %v6068_v37 = vld [vmem:[#allocation8 + $0x8e4] ss:$24 sps:$4 sm:$0xff]  }
 0x1ab   : > { %4176 = vmatprep.subr.bf16.mxu1 %v5993_v38  ;;  %v6071_v38 = vld [vmem:[#allocation7 + $0x2d4] ss:$24 sps:$4 sm:$0xff]  }
 0x1ad   : > { %2696 = vmatpush1.bf16.msra.mxu0 %v5988_v39  ;;  %v6066_v39 = vld [vmem:[#allocation8 + $0x8e0] ss:$24 sps:$4 sm:$0xff]  }
 0x1ae   : > { %4177 = vmatpush1.bf16.msra.mxu1 %v5991_v40  ;;  %2697 = vmatprep.subr.bf16.mxu0 %v5996_v49  ;;  %v6069_v40 = vld [vmem:[#allocation7 + $0x2d0] ss:$24 sps:$4 sm:$0xff]  }
 0x1af   : > { %4178 = vmatprep.subr.bf16.mxu1 %v5999_v8  ;;  %v329_v49 = vld [vmem:[%s6958_s6] sm:$0xff] }
 0x1b0   : > { %v6074_v8 = vld [vmem:[#allocation7 + $0x304] ss:$24 sps:$4 sm:$0xff]  }
 0x1b1   : > { %2698 = vmatpush1.bf16.msra.mxu0 %v5994_v9  ;;  %v6077_v9 = vld [vmem:[#allocation7 + $0x604] ss:$24 sps:$4 sm:$0xff]  }
 0x1b2   : > { %4179 = vmatpush1.bf16.msra.mxu1 %v5997_v52  ;;  %2699 = vmatprep.subr.bf16.mxu0 %v6002_v41  ;;  %v332_v52 = vld [vmem:[%s6958_s6 + $0x18] sm:$0xff]  ;;  %v334_v41 = vld [vmem:[%s6958_s6 + $0x28] sm:$0xff] }
 0x1b3   : > { %4180 = vmatprep.subr.bf16.mxu1 %v6005_v42  ;;  %v6072_v42 = vld [vmem:[#allocation7 + $0x300] ss:$24 sps:$4 sm:$0xff]  }
 0x1b5   : > { %2700 = vmatpush1.bf16.msra.mxu0 %v6000_v35  ;;  %v6075_v35 = vld [vmem:[#allocation7 + $0x600] ss:$24 sps:$4 sm:$0xff]  }
 0x1b6   : > { %4181 = vmatpush1.bf16.msra.mxu1 %v6003_v43  ;;  %2701 = vmatprep.subr.bf16.mxu0 %v6008_v44  ;;  %v7026_v43 = vpack.c.bf16 %v329_v49, %v329_v49  ;;  %v6080_v44 = vld [vmem:[#allocation7 + $0x334] ss:$24 sps:$4 sm:$0xff]   ;;  %v6141_v49 = vld [vmem:[#allocation7 + $0x810] ss:$24 sps:$4 sm:$0xff]  }
 0x1b7   : > { %4182 = vmatprep.subr.bf16.mxu1 %v6011_v45  ;;  %v2397_v51 = vpop.f32.mrb[0].mxu0  ;;  %v6083_v45 = vld [vmem:[#allocation7 + $0x634] ss:$24 sps:$4 sm:$0xff]  }
 0x1b8   : > { %v2438_v53 = vpop.f32.mrb[0].mxu1  ;;  %v2399_v57 = vpop.f32.mrb[1].mxu0 }
 0x1b9   : > { %v7019_v56 = vadd.f32 %v2438_v53, %v2397_v51  ;;  %v2440_v58 = vpop.f32.mrb[1].mxu1  ;;  %v2401_v60 = vpop.f32.mrb[2].mxu0  ;;  %2702 = vmatpush1.bf16.msra.mxu0 %v6006_v46  ;;  %v7028_v46 = vpack.c.bf16 %v332_v52, %v332_v52  ;;  %v6086_v51 = vld [vmem:[#allocation7 + $0x364] ss:$24 sps:$4 sm:$0xff]   ;;  %v6144_v52 = vld [vmem:[#allocation7 + $0x540] ss:$24 sps:$4 sm:$0xff]  }
 0x1ba   : > { %v7021_v59 = vadd.f32 %v2440_v58, %v2399_v57  ;;  %v2442_v61 = vpop.f32.mrb[2].mxu1  ;;  %4183 = vmatpush1.bf16.msra.mxu1 %v6009_v47  ;;  %v2402_v62 = vpop.f32.mrb[3].mxu0  ;;  %2703 = vmatprep.subr.bf16.mxu0 %v6014_v48  ;;  %v7030_v47 = vpack.c.bf16 %v334_v41, %v334_v41  ;;  %v6078_v48 = vld [vmem:[#allocation7 + $0x330] ss:$24 sps:$4 sm:$0xff]   ;;  %v6089_v53 = vld [vmem:[#allocation7 + $0x664] ss:$24 sps:$4 sm:$0xff]  }
 0x1bb   : > { %v2443_v63 = vpop.f32.mrb[3].mxu1  ;;  %4184 = vmatprep.subr.bf16.mxu1 %v6017_v50  ;;  %v6081_v50 = vld [vmem:[#allocation7 + $0x630] ss:$24 sps:$4 sm:$0xff]   ;;  %v6095_v57 = vld [vmem:[#allocation7 + $0x694] ss:$24 sps:$4 sm:$0xff]  }
 0x1bc   : > { %v6090_v58 = vld [vmem:[#allocation7 + $0x390] ss:$24 sps:$4 sm:$0xff]   ;;  %v6098_v61 = vld [vmem:[#allocation7 + $0x3c4] ss:$24 sps:$4 sm:$0xff]   ;;  %v6096_v63 = vld [vmem:[#allocation7 + $0x3c0] ss:$24 sps:$4 sm:$0xff]  }
 0x1bd   : > { %2704 = vmatpush1.bf16.msra.mxu0 %v6012_v54  ;;  %v6084_v54 = vld [vmem:[#allocation7 + $0x360] ss:$24 sps:$4 sm:$0xff]   ;;  %v6093_v60 = vld [vmem:[#allocation7 + $0x690] ss:$24 sps:$4 sm:$0xff]   ;;  %v6101_v62 = vld [vmem:[#allocation7 + $0x6c4] ss:$24 sps:$4 sm:$0xff]  }
 0x1be   : > { %4185 = vmatpush1.bf16.msra.mxu1 %v6015_v55  ;;  %2705 = vmatprep.subr.bf16.mxu0 %v6020_v0  ;;  %v6087_v55 = vld [vmem:[#allocation7 + $0x660] ss:$24 sps:$4 sm:$0xff]  }
 0x1bf   : > { %4186 = vmatprep.subr.bf16.mxu1 %v6023_v1  ;;  %v6099_v0 = vld [vmem:[#allocation7 + $0x6c0] ss:$24 sps:$4 sm:$0xff]   ;;  %v6104_v1 = vld [vmem:[#allocation7 + $0x3f4] ss:$24 sps:$4 sm:$0xff]  }
 0x1c0   : > { %v6147_v41 = vld [vmem:[#allocation7 + $0x840] ss:$24 sps:$4 sm:$0xff]  }
 0x1c1   : > { %2706 = vmatpush1.bf16.msra.mxu0 %v6018_v2  ;;  %v6107_v2 = vld [vmem:[#allocation7 + $0x6f4] ss:$24 sps:$4 sm:$0xff]  }
 0x1c2   : > { %4187 = vmatpush1.bf16.msra.mxu1 %v6021_v3  ;;  %2707 = vmatprep.subr.bf16.mxu0 %v6026_v4  ;;  %v6102_v3 = vld [vmem:[#allocation7 + $0x3f0] ss:$24 sps:$4 sm:$0xff]  }
 0x1c3   : > { %4188 = vmatprep.subr.bf16.mxu1 %v6029_v5  ;;  %v6105_v4 = vld [vmem:[#allocation7 + $0x6f0] ss:$24 sps:$4 sm:$0xff]   ;;  %v6110_v5 = vld [vmem:[#allocation7 + $0x424] ss:$24 sps:$4 sm:$0xff]  }
 0x1c5   : > { %2708 = vmatpush1.bf16.msra.mxu0 %v6024_v6  ;;  %v6113_v6 = vld [vmem:[#allocation7 + $0x724] ss:$24 sps:$4 sm:$0xff]  }
 0x1c6   : > { %4189 = vmatpush1.bf16.msra.mxu1 %v6027_v7  ;;  %2709 = vmatprep.subr.bf16.mxu0 %v6032_v10 }
 0x1c7   : > { %4190 = vmatprep.subr.bf16.mxu1 %v6035_v11  ;;  %v6108_v11 = vld [vmem:[#allocation7 + $0x420] ss:$24 sps:$4 sm:$0xff]  }
 0x1c9   : > { %2710 = vmatpush1.bf16.msra.mxu0 %v6030_v12  ;;  %v6111_v12 = vld [vmem:[#allocation7 + $0x720] ss:$24 sps:$4 sm:$0xff]  }
 0x1ca   : > { %4191 = vmatpush1.bf16.msra.mxu1 %v6033_v13  ;;  %2711 = vmatprep.subr.bf16.mxu0 %v6038_v14 }
 0x1cb   : > { %4192 = vmatprep.subr.bf16.mxu1 %v6041_v15 }
 0x1cd   : > { %2712 = vmatpush1.bf16.msra.mxu0 %v6036_v16 }
 0x1ce   : > { %4193 = vmatpush1.bf16.msra.mxu1 %v6039_v18  ;;  %2713 = vmatprep.subr.bf16.mxu0 %v6044_v19 }
 0x1cf   : > { %4194 = vmatprep.subr.bf16.mxu1 %v6047_v20 }
 0x1d1   : > { %2714 = vmatpush1.bf16.msra.mxu0 %v6042_v21 }
 0x1d2   : > { %4195 = vmatpush1.bf16.msra.mxu1 %v6045_v22  ;;  %2715 = vmatprep.subr.bf16.mxu0 %v6050_v23  ;;  %v6116_v22 = vld [vmem:[#allocation7 + $0x454] ss:$24 sps:$4 sm:$0xff]  }
 0x1d3   : > { %4196 = vmatprep.subr.bf16.mxu1 %v6053_v24  ;;  %v6119_v23 = vld [vmem:[#allocation7 + $0x754] ss:$24 sps:$4 sm:$0xff]   ;;  %v6117_v24 = vld [vmem:[#allocation7 + $0x750] ss:$24 sps:$4 sm:$0xff]  }
 0x1d5   : > { %2716 = vmatpush1.bf16.msra.mxu0 %v6048_v25  ;;  %v6122_v25 = vld [vmem:[#allocation7 + $0x484] ss:$24 sps:$4 sm:$0xff]  }
 0x1d6   : > { %4197 = vmatpush1.bf16.msra.mxu1 %v6051_v26  ;;  %2717 = vmatprep.subr.bf16.mxu0 %v6056_v27  ;;  %v6125_v26 = vld [vmem:[#allocation7 + $0x784] ss:$24 sps:$4 sm:$0xff]   ;;  %v6123_v27 = vld [vmem:[#allocation7 + $0x780] ss:$24 sps:$4 sm:$0xff]  }
 0x1d7   : > { %4198 = vmatprep.subr.bf16.mxu1 %v6059_v28  ;;  %v6128_v28 = vld [vmem:[#allocation7 + $0x4b4] ss:$24 sps:$4 sm:$0xff]  }
 0x1d9   : > { %2718 = vmatpush1.bf16.msra.mxu0 %v6054_v29  ;;  %v6131_v29 = vld [vmem:[#allocation7 + $0x7b4] ss:$24 sps:$4 sm:$0xff]  }
 0x1da   : > { %4199 = vmatpush1.bf16.msra.mxu1 %v6057_v30  ;;  %2719 = vmatprep.subr.bf16.mxu0 %v6062_v31  ;;  %v6126_v30 = vld [vmem:[#allocation7 + $0x4b0] ss:$24 sps:$4 sm:$0xff]  }
 0x1db   : > { %4200 = vmatprep.subr.bf16.mxu1 %v6065_v32  ;;  %v6129_v31 = vld [vmem:[#allocation7 + $0x7b0] ss:$24 sps:$4 sm:$0xff]   ;;  %v6134_v32 = vld [vmem:[#allocation7 + $0x4e4] ss:$24 sps:$4 sm:$0xff]  }
 0x1dd   : > { %2720 = vmatpush1.bf16.msra.mxu0 %v6060_v34  ;;  %v6137_v34 = vld [vmem:[#allocation7 + $0x7e4] ss:$24 sps:$4 sm:$0xff]  }
 0x1de   : > { %4201 = vmatpush1.bf16.msra.mxu1 %v6063_v36  ;;  %2721 = vmatprep.subr.bf16.mxu0 %v6068_v37  ;;  %v6132_v36 = vld [vmem:[#allocation7 + $0x4e0] ss:$24 sps:$4 sm:$0xff]  }
 0x1df   : > { %4202 = vmatprep.subr.bf16.mxu1 %v6071_v38  ;;  %v6135_v37 = vld [vmem:[#allocation7 + $0x7e0] ss:$24 sps:$4 sm:$0xff]   ;;  %v6140_v38 = vld [vmem:[#allocation7 + $0x514] ss:$24 sps:$4 sm:$0xff]  }
 0x1e1   : > { %2722 = vmatpush1.bf16.msra.mxu0 %v6066_v39  ;;  %v6143_v39 = vld [vmem:[#allocation7 + $0x814] ss:$24 sps:$4 sm:$0xff]  }
 0x1e2   : > { %4203 = vmatpush1.bf16.msra.mxu1 %v6069_v40  ;;  %4213 = vmatprep.subr.bf16.mxu0 %v6074_v8  ;;  %v6138_v40 = vld [vmem:[#allocation7 + $0x510] ss:$24 sps:$4 sm:$0xff]   ;;  %v6146_v8 = vld [vmem:[#allocation7 + $0x544] ss:$24 sps:$4 sm:$0xff]  }
 0x1e3   : > { %4254 = vmatprep.subr.bf16.mxu1 %v6077_v9  ;;  %v6149_v9 = vld [vmem:[#allocation7 + $0x844] ss:$24 sps:$4 sm:$0xff]  }
 0x1e4   : > { %2724 = vmatmul.mubr.bf16.vlgmr.msra.gmra.mrb[16].mxu0 %v7002_v17  ;;  %v6092_v17 = vld [vmem:[#allocation7 + $0x394] ss:$24 sps:$4 sm:$0xff]  }
 0x1e5   : > { %4205 = vmatmul.mubr.bf16.vlgmr.msra.gmra.mrb[16].mxu1 %v7026_v43  ;;  %4214 = vmatpush1.bf16.msra.mxu0 %v6072_v42  ;;  %v6152_v42 = vld [vmem:[#allocation7 + $0x574] ss:$24 sps:$4 sm:$0xff]  }
 0x1e6   : > { %4255 = vmatpush1.bf16.msra.mxu1 %v6075_v35  ;;  %4215 = vmatprep.subr.bf16.mxu0 %v6080_v44  ;;  %v6155_v35 = vld [vmem:[#allocation7 + $0x874] ss:$24 sps:$4 sm:$0xff]   ;;  %v6150_v44 = vld [vmem:[#allocation7 + $0x570] ss:$24 sps:$4 sm:$0xff]  }
 0x1e7   : > { %4256 = vmatprep.subr.bf16.mxu1 %v6083_v45  ;;  %4245 = vmatprep.mubr.bf16.mxu0 %v7028_v46  ;;  %v6153_v45 = vld [vmem:[#allocation7 + $0x870] ss:$24 sps:$4 sm:$0xff]  }
 0x1e8   : > { %4286 = vmatprep.mubr.bf16.mxu1 %v7030_v47 }
 0x1e9   : > { %4216 = vmatpush1.bf16.msra.mxu0 %v6078_v48  ;;  %v6158_v48 = vld [vmem:[#allocation7 + $0x5a4] ss:$24 sps:$4 sm:$0xff]  }
 0x1ea   : > { %4257 = vmatpush1.bf16.msra.mxu1 %v6081_v50  ;;  %4217 = vmatprep.subr.bf16.mxu0 %v6086_v51  ;;  %v6161_v50 = vld [vmem:[#allocation7 + $0x8a4] ss:$24 sps:$4 sm:$0xff]   ;;  %v6156_v51 = vld [vmem:[#allocation7 + $0x5a0] ss:$24 sps:$4 sm:$0xff]  }
 0x1eb   : > { %4258 = vmatprep.subr.bf16.mxu1 %v6089_v53  ;;  %v6159_v53 = vld [vmem:[#allocation7 + $0x8a0] ss:$24 sps:$4 sm:$0xff]  }
 0x1ed   : > { %4218 = vmatpush1.bf16.msra.mxu0 %v6084_v54  ;;  %v6164_v54 = vld [vmem:[#allocation7 + $0x5d4] ss:$24 sps:$4 sm:$0xff]  }
 0x1ee   : > { %4259 = vmatpush1.bf16.msra.mxu1 %v6087_v55  ;;  %4219 = vmatprep.subr.bf16.mxu0 %v6092_v17  ;;  %v6167_v55 = vld [vmem:[#allocation7 + $0x8d4] ss:$24 sps:$4 sm:$0xff]   ;;  %v6162_v17 = vld [vmem:[#allocation7 + $0x5d0] ss:$24 sps:$4 sm:$0xff]  }
 0x1ef   : > { %4260 = vmatprep.subr.bf16.mxu1 %v6095_v57  ;;  %v6165_v57 = vld [vmem:[#allocation7 + $0x8d0] ss:$24 sps:$4 sm:$0xff]  }
 0x1f1   : > { %4220 = vmatpush1.bf16.msra.mxu0 %v6090_v58  ;;  %v331_v58 = vld [vmem:[%s6958_s6 + $0x10] sm:$0xff] }
 0x1f2   : > { %4261 = vmatpush1.bf16.msra.mxu1 %v6093_v60  ;;  %4221 = vmatprep.subr.bf16.mxu0 %v6098_v61  ;;  %v333_v60 = vld [vmem:[%s6958_s6 + $0x20] sm:$0xff] }
 0x1f3   : > { %4262 = vmatprep.subr.bf16.mxu1 %v6101_v62  ;;  %v6170_v61 = vld [vmem:[#allocation7 + $0xc] ss:$24 sps:$4 sm:$0xff]  }
 0x1f4   : > { %v6173_v62 = vld [vmem:[#allocation7 + $0x30c] ss:$24 sps:$4 sm:$0xff]  }
 0x1f5   : > { %4222 = vmatpush1.bf16.msra.mxu0 %v6096_v63  ;;  %v7048_v63 = vpack.c.bf16 %v331_v58, %v331_v58  ;;  %v6228_v58 = vld [vmem:[#allocation7 + $0x1e8] ss:$24 sps:$4 sm:$0xff]  }
 0x1f6   : > { %4263 = vmatpush1.bf16.msra.mxu1 %v6099_v0  ;;  %4223 = vmatprep.subr.bf16.mxu0 %v6104_v1  ;;  %v7050_v0 = vpack.c.bf16 %v333_v60, %v333_v60  ;;  %v6168_v1 = vld [vmem:[#allocation7 + $0x8] ss:$24 sps:$4 sm:$0xff]  }
 0x1f7   : > { %4264 = vmatprep.subr.bf16.mxu1 %v6107_v2  ;;  %v2479_v7 = vpop.f32.mrb[4].mxu0  ;;  %v6171_v2 = vld [vmem:[#allocation7 + $0x308] ss:$24 sps:$4 sm:$0xff]  }
 0x1f8   : > { %v7036_v10 = vpop.f32.mrb[4].mxu1  ;;  %v7039_v13 = vadd.f32 %v2479_v7, %v7019_v56  ;;  %v2481_v14 = vpop.f32.mrb[5].mxu0  ;;  %v6114_v56 = vld [vmem:[#allocation7 + $0x450] ss:$24 sps:$4 sm:$0xff]   ;;  %v6182_v7 = vld [vmem:[#allocation7 + $0x6c] ss:$24 sps:$4 sm:$0xff]  }
 0x1f9   : > { %v7041_v15 = vpop.f32.mrb[5].mxu1  ;;  %v7044_v16 = vadd.f32 %v2481_v14, %v7021_v59  ;;  %v2483_v18 = vpop.f32.mrb[6].mxu0  ;;  %4224 = vmatpush1.bf16.msra.mxu0 %v6102_v3  ;;  %v6120_v59 = vld [vmem:[#allocation7 + $0x480] ss:$24 sps:$4 sm:$0xff]   ;;  %v6176_v3 = vld [vmem:[#allocation7 + $0x3c] ss:$24 sps:$4 sm:$0xff]  }
 0x1fa   : > { %v2524_v19 = vpop.f32.mrb[6].mxu1  ;;  %4265 = vmatpush1.bf16.msra.mxu1 %v6105_v4  ;;  %v2484_v20 = vpop.f32.mrb[7].mxu0  ;;  %4225 = vmatprep.subr.bf16.mxu0 %v6110_v5  ;;  %v6179_v4 = vld [vmem:[#allocation7 + $0x33c] ss:$24 sps:$4 sm:$0xff]   ;;  %v6174_v5 = vld [vmem:[#allocation7 + $0x38] ss:$24 sps:$4 sm:$0xff]  }
 0x1fb   : > { %v2525_v21 = vpop.f32.mrb[7].mxu1  ;;  %4266 = vmatprep.subr.bf16.mxu1 %v6113_v6  ;;  %v6177_v6 = vld [vmem:[#allocation7 + $0x338] ss:$24 sps:$4 sm:$0xff]   ;;  %v6183_v14 = vld [vmem:[#allocation7 + $0x368] ss:$24 sps:$4 sm:$0xff]  }
 0x1fc   : > { %v6188_v18 = vld [vmem:[#allocation7 + $0x9c] ss:$24 sps:$4 sm:$0xff]   ;;  %v6186_v20 = vld [vmem:[#allocation7 + $0x98] ss:$24 sps:$4 sm:$0xff]   ;;  %v6231_v60 = vld [vmem:[#allocation7 + $0x4e8] ss:$24 sps:$4 sm:$0xff]  }
 0x1fd   : > { %4226 = vmatpush1.bf16.msra.mxu0 %v6108_v11  ;;  %v6185_v11 = vld [vmem:[#allocation7 + $0x36c] ss:$24 sps:$4 sm:$0xff]   ;;  %v6191_v19 = vld [vmem:[#allocation7 + $0x39c] ss:$24 sps:$4 sm:$0xff]   ;;  %v6189_v21 = vld [vmem:[#allocation7 + $0x398] ss:$24 sps:$4 sm:$0xff]  }
 0x1fe   : > { %4267 = vmatpush1.bf16.msra.mxu1 %v6111_v12  ;;  %4227 = vmatprep.subr.bf16.mxu0 %v6116_v22  ;;  %v6180_v12 = vld [vmem:[#allocation7 + $0x68] ss:$24 sps:$4 sm:$0xff]   ;;  %v6194_v22 = vld [vmem:[#allocation7 + $0xcc] ss:$24 sps:$4 sm:$0xff]  }
 0x1ff   : > { %4268 = vmatprep.subr.bf16.mxu1 %v6119_v23  ;;  %v6197_v23 = vld [vmem:[#allocation7 + $0x3cc] ss:$24 sps:$4 sm:$0xff]  }
 0x201   : > { %4228 = vmatpush1.bf16.msra.mxu0 %v6114_v56  ;;  %v6192_v56 = vld [vmem:[#allocation7 + $0xc8] ss:$24 sps:$4 sm:$0xff]  }
 0x202   : > { %4269 = vmatpush1.bf16.msra.mxu1 %v6117_v24  ;;  %4229 = vmatprep.subr.bf16.mxu0 %v6122_v25  ;;  %v6195_v24 = vld [vmem:[#allocation7 + $0x3c8] ss:$24 sps:$4 sm:$0xff]   ;;  %v6200_v25 = vld [vmem:[#allocation7 + $0xfc] ss:$24 sps:$4 sm:$0xff]  }
 0x203   : > { %4270 = vmatprep.subr.bf16.mxu1 %v6125_v26  ;;  %v6203_v26 = vld [vmem:[#allocation7 + $0x3fc] ss:$24 sps:$4 sm:$0xff]  }
 0x205   : > { %4230 = vmatpush1.bf16.msra.mxu0 %v6120_v59  ;;  %v6198_v59 = vld [vmem:[#allocation7 + $0xf8] ss:$24 sps:$4 sm:$0xff]  }
 0x206   : > { %4271 = vmatpush1.bf16.msra.mxu1 %v6123_v27  ;;  %4231 = vmatprep.subr.bf16.mxu0 %v6128_v28  ;;  %v6201_v27 = vld [vmem:[#allocation7 + $0x3f8] ss:$24 sps:$4 sm:$0xff]   ;;  %v6206_v28 = vld [vmem:[#allocation7 + $0x12c] ss:$24 sps:$4 sm:$0xff]  }
 0x207   : > { %4272 = vmatprep.subr.bf16.mxu1 %v6131_v29  ;;  %v6209_v29 = vld [vmem:[#allocation7 + $0x42c] ss:$24 sps:$4 sm:$0xff]  }
 0x209   : > { %4232 = vmatpush1.bf16.msra.mxu0 %v6126_v30 }
 0x20a   : > { %4273 = vmatpush1.bf16.msra.mxu1 %v6129_v31  ;;  %4233 = vmatprep.subr.bf16.mxu0 %v6134_v32 }
 0x20b   : > { %4274 = vmatprep.subr.bf16.mxu1 %v6137_v34 }
 0x20d   : > { %4234 = vmatpush1.bf16.msra.mxu0 %v6132_v36 }
 0x20e   : > { %4275 = vmatpush1.bf16.msra.mxu1 %v6135_v37  ;;  %4235 = vmatprep.subr.bf16.mxu0 %v6140_v38 }
 0x20f   : > { %4276 = vmatprep.subr.bf16.mxu1 %v6143_v39 }
 0x211   : > { %4236 = vmatpush1.bf16.msra.mxu0 %v6138_v40  ;;  %v6204_v40 = vld [vmem:[#allocation7 + $0x128] ss:$24 sps:$4 sm:$0xff]  }
 0x212   : > { %4277 = vmatpush1.bf16.msra.mxu1 %v6141_v49  ;;  %4237 = vmatprep.subr.bf16.mxu0 %v6146_v8  ;;  %v6207_v49 = vld [vmem:[#allocation7 + $0x428] ss:$24 sps:$4 sm:$0xff]  }
 0x213   : > { %4278 = vmatprep.subr.bf16.mxu1 %v6149_v9 }
 0x215   : > { %4238 = vmatpush1.bf16.msra.mxu0 %v6144_v52 }
 0x216   : > { %4279 = vmatpush1.bf16.msra.mxu1 %v6147_v41  ;;  %4239 = vmatprep.subr.bf16.mxu0 %v6152_v42  ;;  %v6212_v41 = vld [vmem:[#allocation7 + $0x15c] ss:$24 sps:$4 sm:$0xff]  }
 0x217   : > { %4280 = vmatprep.subr.bf16.mxu1 %v6155_v35  ;;  %v6215_v42 = vld [vmem:[#allocation7 + $0x45c] ss:$24 sps:$4 sm:$0xff]  }
 0x219   : > { %4240 = vmatpush1.bf16.msra.mxu0 %v6150_v44  ;;  %v6218_v44 = vld [vmem:[#allocation7 + $0x18c] ss:$24 sps:$4 sm:$0xff]  }
 0x21a   : > { %4281 = vmatpush1.bf16.msra.mxu1 %v6153_v45  ;;  %4241 = vmatprep.subr.bf16.mxu0 %v6158_v48  ;;  %v6221_v45 = vld [vmem:[#allocation7 + $0x48c] ss:$24 sps:$4 sm:$0xff]   ;;  %v6216_v48 = vld [vmem:[#allocation7 + $0x188] ss:$24 sps:$4 sm:$0xff]  }
 0x21b   : > { %4282 = vmatprep.subr.bf16.mxu1 %v6161_v50  ;;  %v6219_v50 = vld [vmem:[#allocation7 + $0x488] ss:$24 sps:$4 sm:$0xff]  }
 0x21d   : > { %4242 = vmatpush1.bf16.msra.mxu0 %v6156_v51  ;;  %v6224_v51 = vld [vmem:[#allocation7 + $0x1bc] ss:$24 sps:$4 sm:$0xff]  }
 0x21e   : > { %4283 = vmatpush1.bf16.msra.mxu1 %v6159_v53  ;;  %4243 = vmatprep.subr.bf16.mxu0 %v6164_v54  ;;  %v6227_v53 = vld [vmem:[#allocation7 + $0x4bc] ss:$24 sps:$4 sm:$0xff]   ;;  %v6222_v54 = vld [vmem:[#allocation7 + $0x1b8] ss:$24 sps:$4 sm:$0xff]  }
 0x21f   : > { %4284 = vmatprep.subr.bf16.mxu1 %v6167_v55  ;;  %v6225_v55 = vld [vmem:[#allocation7 + $0x4b8] ss:$24 sps:$4 sm:$0xff]  }
 0x221   : > { %4244 = vmatpush1.bf16.msra.mxu0 %v6162_v17  ;;  %v6230_v17 = vld [vmem:[#allocation7 + $0x1ec] ss:$24 sps:$4 sm:$0xff]  }
 0x222   : > { %4285 = vmatpush1.bf16.msra.mxu1 %v6165_v57  ;;  %4295 = vmatprep.subr.bf16.mxu0 %v6170_v61  ;;  %v6233_v57 = vld [vmem:[#allocation7 + $0x4ec] ss:$24 sps:$4 sm:$0xff]   ;;  %v6236_v61 = vld [vmem:[#allocation7 + $0x21c] ss:$24 sps:$4 sm:$0xff]  }
 0x223   : > { %4336 = vmatprep.subr.bf16.mxu1 %v6173_v62  ;;  %v6239_v62 = vld [vmem:[#allocation7 + $0x51c] ss:$24 sps:$4 sm:$0xff]  }
 0x224   : > { %4246 = vmatmul.mubr.bf16.vlgmr.msra.gmra.mrb[20].mxu0 %v7048_v63 }
 0x225   : > { %4287 = vmatmul.mubr.bf16.vlgmr.msra.gmra.mrb[20].mxu1 %v7050_v0  ;;  %4296 = vmatpush1.bf16.msra.mxu0 %v6168_v1  ;;  %v6234_v1 = vld [vmem:[#allocation7 + $0x218] ss:$24 sps:$4 sm:$0xff]  }
 0x226   : > { %4337 = vmatpush1.bf16.msra.mxu1 %v6171_v2  ;;  %4297 = vmatprep.subr.bf16.mxu0 %v6176_v3  ;;  %v6237_v2 = vld [vmem:[#allocation7 + $0x518] ss:$24 sps:$4 sm:$0xff]   ;;  %v6242_v3 = vld [vmem:[#allocation7 + $0x24c] ss:$24 sps:$4 sm:$0xff]  }
 0x227   : > { %4338 = vmatprep.subr.bf16.mxu1 %v6179_v4  ;;  %4327 = vmatprep.mubr.bf16.mxu0 %v7013_v33  ;;  %v6245_v4 = vld [vmem:[#allocation7 + $0x54c] ss:$24 sps:$4 sm:$0xff]  }
 0x228   : > { %4368 = vmatprep.mubr.bf16.mxu1 %v7028_v46 }
 0x229   : > { %4298 = vmatpush1.bf16.msra.mxu0 %v6174_v5  ;;  %v6240_v5 = vld [vmem:[#allocation7 + $0x248] ss:$24 sps:$4 sm:$0xff]  }
 0x22a   : > { %4339 = vmatpush1.bf16.msra.mxu1 %v6177_v6  ;;  %4299 = vmatprep.subr.bf16.mxu0 %v6182_v7  ;;  %v6243_v6 = vld [vmem:[#allocation7 + $0x548] ss:$24 sps:$4 sm:$0xff]   ;;  %v6248_v7 = vld [vmem:[#allocation7 + $0x27c] ss:$24 sps:$4 sm:$0xff]  }
 0x22b   : > { %4340 = vmatprep.subr.bf16.mxu1 %v6185_v11  ;;  %v6251_v11 = vld [vmem:[#allocation7 + $0x57c] ss:$24 sps:$4 sm:$0xff]  }
 0x22d   : > { %4300 = vmatpush1.bf16.msra.mxu0 %v6180_v12  ;;  %v6246_v12 = vld [vmem:[#allocation7 + $0x278] ss:$24 sps:$4 sm:$0xff]  }
 0x22e   : > { %4341 = vmatpush1.bf16.msra.mxu1 %v6183_v14  ;;  %4301 = vmatprep.subr.bf16.mxu0 %v6188_v18  ;;  %v6249_v14 = vld [vmem:[#allocation7 + $0x578] ss:$24 sps:$4 sm:$0xff]   ;;  %v6254_v18 = vld [vmem:[#allocation7 + $0x2ac] ss:$24 sps:$4 sm:$0xff]  }
 0x22f   : > { %4342 = vmatprep.subr.bf16.mxu1 %v6191_v19  ;;  %v6257_v19 = vld [vmem:[#allocation7 + $0x5ac] ss:$24 sps:$4 sm:$0xff]  }
 0x231   : > { %4302 = vmatpush1.bf16.msra.mxu0 %v6186_v20  ;;  %v6252_v20 = vld [vmem:[#allocation7 + $0x2a8] ss:$24 sps:$4 sm:$0xff]  }
 0x232   : > { %4343 = vmatpush1.bf16.msra.mxu1 %v6189_v21  ;;  %4303 = vmatprep.subr.bf16.mxu0 %v6194_v22  ;;  %v6255_v21 = vld [vmem:[#allocation7 + $0x5a8] ss:$24 sps:$4 sm:$0xff]   ;;  %v6260_v22 = vld [vmem:[#allocation7 + $0x2dc] ss:$24 sps:$4 sm:$0xff]  }
 0x233   : > { %4344 = vmatprep.subr.bf16.mxu1 %v6197_v23  ;;  %v6263_v23 = vld [vmem:[#allocation7 + $0x5dc] ss:$24 sps:$4 sm:$0xff]  }
 0x235   : > { %4304 = vmatpush1.bf16.msra.mxu0 %v6192_v56  ;;  %v6258_v56 = vld [vmem:[#allocation7 + $0x2d8] ss:$24 sps:$4 sm:$0xff]  }
 0x236   : > { %4345 = vmatpush1.bf16.msra.mxu1 %v6195_v24  ;;  %4305 = vmatprep.subr.bf16.mxu0 %v6200_v25  ;;  %v6261_v24 = vld [vmem:[#allocation7 + $0x5d8] ss:$24 sps:$4 sm:$0xff]   ;;  %v6266_v25 = vld [vmem:[#allocation7 + $0x60c] ss:$24 sps:$4 sm:$0xff]  }
 0x237   : > { %4346 = vmatprep.subr.bf16.mxu1 %v6203_v26  ;;  %v2561_v30 = vpop.f32.mrb[8].mxu0  ;;  %v6269_v26 = vld [vmem:[#allocation7 + $0x14] ss:$24 sps:$4 sm:$0xff]  }
 0x238   : > { %v2602_v31 = vpop.f32.mrb[8].mxu1  ;;  %v2562_v32 = vadd.f32 %v2561_v30, %v7036_v10  ;;  %v2563_v34 = vpop.f32.mrb[9].mxu0  ;;  %v6210_v10 = vld [vmem:[#allocation7 + $0x158] ss:$24 sps:$4 sm:$0xff]  }
 0x239   : > { %v2604_v36 = vpop.f32.mrb[9].mxu1  ;;  %v2564_v37 = vadd.f32 %v2563_v34, %v7041_v15  ;;  %v2565_v38 = vpop.f32.mrb[10].mxu0  ;;  %4306 = vmatpush1.bf16.msra.mxu0 %v6198_v59  ;;  %v6213_v15 = vld [vmem:[#allocation7 + $0x458] ss:$24 sps:$4 sm:$0xff]   ;;  %v6264_v59 = vld [vmem:[#allocation7 + $0x608] ss:$24 sps:$4 sm:$0xff]  }
 0x23a   : > { %v2606_v39 = vpop.f32.mrb[10].mxu1  ;;  %4347 = vmatpush1.bf16.msra.mxu1 %v6201_v27  ;;  %v7058_v8 = vadd.f32 %v2602_v31, %v2562_v32  ;;  %v2566_v9 = vpop.f32.mrb[11].mxu0  ;;  %4307 = vmatprep.subr.bf16.mxu0 %v6206_v28  ;;  %v6267_v27 = vld [vmem:[#allocation7 + $0x10] ss:$24 sps:$4 sm:$0xff]   ;;  %v6272_v28 = vld [vmem:[#allocation7 + $0x63c] ss:$24 sps:$4 sm:$0xff]  }
 0x23b   : > { %v2607_v52 = vpop.f32.mrb[11].mxu1  ;;  %4348 = vmatprep.subr.bf16.mxu1 %v6209_v29  ;;  %v7060_v35 = vadd.f32 %v2604_v36, %v2564_v37  ;;  %v6275_v29 = vld [vmem:[#allocation7 + $0x44] ss:$24 sps:$4 sm:$0xff]   ;;  %v6270_v30 = vld [vmem:[#allocation7 + $0x638] ss:$24 sps:$4 sm:$0xff]  }
 0x23c   : > { %v6273_v31 = vld [vmem:[#allocation7 + $0x40] ss:$24 sps:$4 sm:$0xff]   ;;  %v6278_v32 = vld [vmem:[#allocation7 + $0x66c] ss:$24 sps:$4 sm:$0xff]   ;;  %v6279_v37 = vld [vmem:[#allocation7 + $0x70] ss:$24 sps:$4 sm:$0xff]  }
 0x23d   : > { %4308 = vmatpush1.bf16.msra.mxu0 %v6204_v40  ;;  %v6281_v34 = vld [vmem:[#allocation7 + $0x74] ss:$24 sps:$4 sm:$0xff]   ;;  %v6276_v36 = vld [vmem:[#allocation7 + $0x668] ss:$24 sps:$4 sm:$0xff]   ;;  %v6287_v39 = vld [vmem:[#allocation7 + $0xa4] ss:$24 sps:$4 sm:$0xff]  }
 0x23e   : > { %4349 = vmatpush1.bf16.msra.mxu1 %v6207_v49  ;;  %4309 = vmatprep.subr.bf16.mxu0 %v6212_v41  ;;  %v6284_v38 = vld [vmem:[#allocation7 + $0x69c] ss:$24 sps:$4 sm:$0xff]   ;;  %v6282_v40 = vld [vmem:[#allocation7 + $0x698] ss:$24 sps:$4 sm:$0xff]   ;;  %v6290_v9 = vld [vmem:[#allocation7 + $0x6cc] ss:$24 sps:$4 sm:$0xff]  }
 0x23f   : > { %4350 = vmatprep.subr.bf16.mxu1 %v6215_v42  ;;  %v6285_v49 = vld [vmem:[#allocation7 + $0xa0] ss:$24 sps:$4 sm:$0xff]   ;;  %v6293_v52 = vld [vmem:[#allocation7 + $0xd4] ss:$24 sps:$4 sm:$0xff]  }
 0x240   : > { %v6288_v41 = vld [vmem:[#allocation7 + $0x6c8] ss:$24 sps:$4 sm:$0xff]   ;;  %v6296_v42 = vld [vmem:[#allocation7 + $0x6fc] ss:$24 sps:$4 sm:$0xff]  }
 0x241   : > { %4310 = vmatpush1.bf16.msra.mxu0 %v6210_v10  ;;  %v6299_v10 = vld [vmem:[#allocation7 + $0x104] ss:$24 sps:$4 sm:$0xff]  }
 0x242   : > { %4351 = vmatpush1.bf16.msra.mxu1 %v6213_v15  ;;  %4311 = vmatprep.subr.bf16.mxu0 %v6218_v44  ;;  %v6294_v15 = vld [vmem:[#allocation7 + $0x6f8] ss:$24 sps:$4 sm:$0xff]  }
 0x243   : > { %4352 = vmatprep.subr.bf16.mxu1 %v6221_v45  ;;  %v6297_v44 = vld [vmem:[#allocation7 + $0x100] ss:$24 sps:$4 sm:$0xff]   ;;  %v6302_v45 = vld [vmem:[#allocation7 + $0x72c] ss:$24 sps:$4 sm:$0xff]  }
 0x245   : > { %4312 = vmatpush1.bf16.msra.mxu0 %v6216_v48  ;;  %v6305_v48 = vld [vmem:[#allocation7 + $0x134] ss:$24 sps:$4 sm:$0xff]  }
 0x246   : > { %4353 = vmatpush1.bf16.msra.mxu1 %v6219_v50  ;;  %4313 = vmatprep.subr.bf16.mxu0 %v6224_v51 }
 0x247   : > { %4354 = vmatprep.subr.bf16.mxu1 %v6227_v53 }
 0x249   : > { %4314 = vmatpush1.bf16.msra.mxu0 %v6222_v54 }
 0x24a   : > { %4355 = vmatpush1.bf16.msra.mxu1 %v6225_v55  ;;  %4315 = vmatprep.subr.bf16.mxu0 %v6230_v17  ;;  %v4544_v17 = vlaneseq }
 0x24b   : > { %4356 = vmatprep.subr.bf16.mxu1 %v6233_v57 }
 0x24d   : > { %4316 = vmatpush1.bf16.msra.mxu0 %v6228_v58 }
 0x24e   : > { %4357 = vmatpush1.bf16.msra.mxu1 %v6231_v60  ;;  %4317 = vmatprep.subr.bf16.mxu0 %v6236_v61  ;;  %v6300_v61 = vld [vmem:[#allocation7 + $0x728] ss:$24 sps:$4 sm:$0xff]  }
 0x24f   : > { %4358 = vmatprep.subr.bf16.mxu1 %v6239_v62  ;;  %v6303_v62 = vld [vmem:[#allocation7 + $0x130] ss:$24 sps:$4 sm:$0xff]  }
 0x251   : > { %4318 = vmatpush1.bf16.msra.mxu0 %v6234_v1 }
 0x252   : > { %4359 = vmatpush1.bf16.msra.mxu1 %v6237_v2  ;;  %4319 = vmatprep.subr.bf16.mxu0 %v6242_v3  ;;  %v6308_v3 = vld [vmem:[#allocation7 + $0x75c] ss:$24 sps:$4 sm:$0xff]  }
 0x253   : > { %4360 = vmatprep.subr.bf16.mxu1 %v6245_v4  ;;  %v6311_v4 = vld [vmem:[#allocation7 + $0x164] ss:$24 sps:$4 sm:$0xff]  }
 0x255   : > { %4320 = vmatpush1.bf16.msra.mxu0 %v6240_v5  ;;  %v7070_v5 = vshrl.u32 %v4544_v17, 7  ;;  %v6356_v17 = vld [vmem:[#allocation7 + $0x8dc] ss:$24 sps:$4 sm:$0xff]  }
 0x256   : > { %4361 = vmatpush1.bf16.msra.mxu1 %v6243_v6  ;;  %4321 = vmatprep.subr.bf16.mxu0 %v6248_v7  ;;  %v6306_v6 = vld [vmem:[#allocation7 + $0x758] ss:$24 sps:$4 sm:$0xff]  }
 0x257   : > { %4362 = vmatprep.subr.bf16.mxu1 %v6251_v11  ;;  %v6309_v7 = vld [vmem:[#allocation7 + $0x160] ss:$24 sps:$4 sm:$0xff]   ;;  %v6314_v11 = vld [vmem:[#allocation7 + $0x78c] ss:$24 sps:$4 sm:$0xff]  }
 0x259   : > { %4322 = vmatpush1.bf16.msra.mxu0 %v6246_v12  ;;  %v6317_v12 = vld [vmem:[#allocation7 + $0x194] ss:$24 sps:$4 sm:$0xff]  }
 0x25a   : > { %4363 = vmatpush1.bf16.msra.mxu1 %v6249_v14  ;;  %4323 = vmatprep.subr.bf16.mxu0 %v6254_v18  ;;  %v7073_v14 = vsub.s32 1, %v7070_v5  ;;  %v7076_v18 = vsub.s32 5, %v7070_v5 }
 0x25b   : > { %4364 = vmatprep.subr.bf16.mxu1 %v6257_v19  ;;  %v7079_v19 = vsub.s32 2, %v7070_v5 }
 0x25d   : > { %4324 = vmatpush1.bf16.msra.mxu0 %v6252_v20  ;;  %v7082_v20 = vsub.s32 6, %v7070_v5 }
 0x25e   : > { %4365 = vmatpush1.bf16.msra.mxu1 %v6255_v21  ;;  %4325 = vmatprep.subr.bf16.mxu0 %v6260_v22  ;;  %v7084_v21 = vld [vmem:[#allocation10] sm:$0x77] }
 0x25f   : > { %4366 = vmatprep.subr.bf16.mxu1 %v6263_v23  ;;  %v4646_v22 = vrot.slane %v7084_v21, %v7073_v14  ;;  %v4650_v23 = vrot.slane %v7084_v21, %v7076_v18 }
 0x261   : > { %4326 = vmatpush1.bf16.msra.mxu0 %v6258_v56  ;;  %v4706_v56 = vrot.slane %v7084_v21, %v7079_v19 }
 0x262   : > { %4367 = vmatpush1.bf16.msra.mxu1 %v6261_v24  ;;  %4377 = vmatprep.subr.bf16.mxu0 %v6266_v25  ;;  %v4710_v24 = vrot.slane %v7084_v21, %v7082_v20  ;;  %v6312_v25 = vld [vmem:[#allocation7 + $0x788] ss:$24 sps:$4 sm:$0xff]  }
 0x263   : > { %4418 = vmatprep.subr.bf16.mxu1 %v6269_v26  ;;  %v6315_v26 = vld [vmem:[#allocation7 + $0x190] ss:$24 sps:$4 sm:$0xff]  }
 0x264   : > { %4328 = vmatmul.mubr.bf16.vlgmr.msra.gmra.mrb[24].mxu0 %v7026_v43 }
 0x265   : > { %4369 = vmatmul.mubr.bf16.vlgmr.msra.gmra.mrb[24].mxu1 %v7048_v63  ;;  %4378 = vmatpush1.bf16.msra.mxu0 %v6264_v59  ;;  %v6320_v59 = vld [vmem:[#allocation7 + $0x7bc] ss:$24 sps:$4 sm:$0xff]  }
 0x266   : > { %4419 = vmatpush1.bf16.msra.mxu1 %v6267_v27  ;;  %4379 = vmatprep.subr.bf16.mxu0 %v6272_v28  ;;  %v6323_v27 = vld [vmem:[#allocation7 + $0x1c4] ss:$24 sps:$4 sm:$0xff]   ;;  %v7095_v28 = vrot.slane %v4646_v22, %v7073_v14  ;;  %v6377_v22 = vld [vmem:[#allocation7 + $0x674] ss:$24 sps:$4 sm:$0xff]  }
 0x267   : > { %4420 = vmatprep.subr.bf16.mxu1 %v6275_v29  ;;  %4409 = vmatprep.mubr.bf16.mxu0 %v7030_v47  ;;  %v7098_v29 = vrot.slane %v4650_v23, %v7073_v14  ;;  %v6372_v23 = vld [vmem:[#allocation7 + $0x370] ss:$24 sps:$4 sm:$0xff]  }
 0x268   : > { %4450 = vmatprep.mubr.bf16.mxu1 %v7013_v33  ;;  %v6291_v33 = vld [vmem:[#allocation7 + $0xd0] ss:$24 sps:$4 sm:$0xff]  }
 0x269   : > { %4380 = vmatpush1.bf16.msra.mxu0 %v6270_v30  ;;  %v7101_v30 = vrot.slane %v4706_v56, %v7079_v19  ;;  %v6375_v56 = vld [vmem:[#allocation7 + $0x670] ss:$24 sps:$4 sm:$0xff]  }
 0x26a   : > { %4421 = vmatpush1.bf16.msra.mxu1 %v6273_v31  ;;  %4381 = vmatprep.subr.bf16.mxu0 %v6278_v32  ;;  %v7104_v31 = vrot.slane %v4710_v24, %v7079_v19  ;;  %v6318_v32 = vld [vmem:[#allocation7 + $0x7b8] ss:$24 sps:$4 sm:$0xff]   ;;  %v6380_v24 = vld [vmem:[#allocation7 + $0x3a4] ss:$24 sps:$4 sm:$0xff]  }
 0x26b   : > { %4422 = vmatprep.subr.bf16.mxu1 %v6281_v34  ;;  %v6321_v34 = vld [vmem:[#allocation7 + $0x1c0] ss:$24 sps:$4 sm:$0xff]  }
 0x26d   : > { %4382 = vmatpush1.bf16.msra.mxu0 %v6276_v36  ;;  %v6326_v36 = vld [vmem:[#allocation7 + $0x7ec] ss:$24 sps:$4 sm:$0xff]  }
 0x26e   : > { %4423 = vmatpush1.bf16.msra.mxu1 %v6279_v37  ;;  %4383 = vmatprep.subr.bf16.mxu0 %v6284_v38  ;;  %v6329_v37 = vld [vmem:[#allocation7 + $0x1f4] ss:$24 sps:$4 sm:$0xff]   ;;  %v6324_v38 = vld [vmem:[#allocation7 + $0x7e8] ss:$24 sps:$4 sm:$0xff]  }
 0x26f   : > { %4424 = vmatprep.subr.bf16.mxu1 %v6287_v39  ;;  %v6327_v39 = vld [vmem:[#allocation7 + $0x1f0] ss:$24 sps:$4 sm:$0xff]  }
 0x271   : > { %4384 = vmatpush1.bf16.msra.mxu0 %v6282_v40  ;;  %v6332_v40 = vld [vmem:[#allocation7 + $0x81c] ss:$24 sps:$4 sm:$0xff]  }
 0x272   : > { %4425 = vmatpush1.bf16.msra.mxu1 %v6285_v49  ;;  %4385 = vmatprep.subr.bf16.mxu0 %v6290_v9  ;;  %v6335_v49 = vld [vmem:[#allocation7 + $0x224] ss:$24 sps:$4 sm:$0xff]   ;;  %v6330_v9 = vld [vmem:[#allocation7 + $0x818] ss:$24 sps:$4 sm:$0xff]  }
 0x273   : > { %4426 = vmatprep.subr.bf16.mxu1 %v6293_v52  ;;  %v6333_v52 = vld [vmem:[#allocation7 + $0x220] ss:$24 sps:$4 sm:$0xff]  }
 0x275   : > { %4386 = vmatpush1.bf16.msra.mxu0 %v6288_v41  ;;  %v6338_v41 = vld [vmem:[#allocation7 + $0x84c] ss:$24 sps:$4 sm:$0xff]  }
 0x276   : > { %4427 = vmatpush1.bf16.msra.mxu1 %v6291_v33  ;;  %4387 = vmatprep.subr.bf16.mxu0 %v6296_v42  ;;  %v6341_v33 = vld [vmem:[#allocation7 + $0x254] ss:$24 sps:$4 sm:$0xff]   ;;  %v6336_v42 = vld [vmem:[#allocation7 + $0x848] ss:$24 sps:$4 sm:$0xff]  }
 0x277   : > { %4428 = vmatprep.subr.bf16.mxu1 %v6299_v10  ;;  %v2643_v50 = vpop.f32.mrb[12].mxu0  ;;  %v6339_v10 = vld [vmem:[#allocation7 + $0x250] ss:$24 sps:$4 sm:$0xff]  }
 0x278   : > { %v2684_v51 = vpop.f32.mrb[12].mxu1  ;;  %v2645_v54 = vpop.f32.mrb[13].mxu0 }
 0x279   : > { %v7066_v53 = vadd.f32 %v2684_v51, %v2643_v50  ;;  %v2686_v55 = vpop.f32.mrb[13].mxu1  ;;  %v2647_v58 = vpop.f32.mrb[14].mxu0  ;;  %4388 = vmatpush1.bf16.msra.mxu0 %v6294_v15  ;;  %v6344_v15 = vld [vmem:[#allocation7 + $0x87c] ss:$24 sps:$4 sm:$0xff]   ;;  %v6350_v50 = vld [vmem:[#allocation7 + $0x8ac] ss:$24 sps:$4 sm:$0xff]  }
 0x27a   : > { %v7068_v57 = vadd.f32 %v2686_v55, %v2645_v54  ;;  %v2688_v60 = vpop.f32.mrb[14].mxu1  ;;  %4429 = vmatpush1.bf16.msra.mxu1 %v6297_v44  ;;  %v2648_v1 = vpop.f32.mrb[15].mxu0  ;;  %4389 = vmatprep.subr.bf16.mxu0 %v6302_v45  ;;  %v6347_v44 = vld [vmem:[#allocation7 + $0x284] ss:$24 sps:$4 sm:$0xff]   ;;  %v6342_v45 = vld [vmem:[#allocation7 + $0x878] ss:$24 sps:$4 sm:$0xff]  }
 0x27b   : > { %v2689_v2 = vpop.f32.mrb[15].mxu1  ;;  %4430 = vmatprep.subr.bf16.mxu1 %v6305_v48  ;;  %v6345_v48 = vld [vmem:[#allocation7 + $0x280] ss:$24 sps:$4 sm:$0xff]   ;;  %v6353_v51 = vld [vmem:[#allocation7 + $0x2b4] ss:$24 sps:$4 sm:$0xff]  }
 0x27c   : > { %v6348_v54 = vld [vmem:[#allocation7 + $0x8a8] ss:$24 sps:$4 sm:$0xff]   ;;  %v6359_v58 = vld [vmem:[#allocation7 + $0x2e4] ss:$24 sps:$4 sm:$0xff]   ;;  %v6354_v60 = vld [vmem:[#allocation7 + $0x8d8] ss:$24 sps:$4 sm:$0xff]  }
 0x27d   : > { %4390 = vmatpush1.bf16.msra.mxu0 %v6300_v61  ;;  %v6351_v55 = vld [vmem:[#allocation7 + $0x2b0] ss:$24 sps:$4 sm:$0xff]   ;;  %v6357_v61 = vld [vmem:[#allocation7 + $0x2e0] ss:$24 sps:$4 sm:$0xff]   ;;  %v6365_v1 = vld [vmem:[#allocation7 + $0x614] ss:$24 sps:$4 sm:$0xff]  }
 0x27e   : > { %4431 = vmatpush1.bf16.msra.mxu1 %v6303_v62  ;;  %4391 = vmatprep.subr.bf16.mxu0 %v6308_v3  ;;  %v6362_v62 = vld [vmem:[#allocation7 + $0x314] ss:$24 sps:$4 sm:$0xff]   ;;  %v6360_v2 = vld [vmem:[#allocation7 + $0x310] ss:$24 sps:$4 sm:$0xff]  }
 0x27f   : > { %4432 = vmatprep.subr.bf16.mxu1 %v6311_v4  ;;  %v6363_v3 = vld [vmem:[#allocation7 + $0x610] ss:$24 sps:$4 sm:$0xff]   ;;  %v6368_v4 = vld [vmem:[#allocation7 + $0x344] ss:$24 sps:$4 sm:$0xff]  }
 0x281   : > { %4392 = vmatpush1.bf16.msra.mxu0 %v6306_v6  ;;  %v6371_v6 = vld [vmem:[#allocation7 + $0x644] ss:$24 sps:$4 sm:$0xff]  }
 0x282   : > { %4433 = vmatpush1.bf16.msra.mxu1 %v6309_v7  ;;  %4393 = vmatprep.subr.bf16.mxu0 %v6314_v11  ;;  %v6366_v7 = vld [vmem:[#allocation7 + $0x340] ss:$24 sps:$4 sm:$0xff]  }
 0x283   : > { %4434 = vmatprep.subr.bf16.mxu1 %v6317_v12  ;;  %v6369_v11 = vld [vmem:[#allocation7 + $0x640] ss:$24 sps:$4 sm:$0xff]   ;;  %v6374_v12 = vld [vmem:[#allocation7 + $0x374] ss:$24 sps:$4 sm:$0xff]  }
 0x285   : > { %4394 = vmatpush1.bf16.msra.mxu0 %v6312_v25  ;;  %v6378_v25 = vld [vmem:[#allocation7 + $0x3a0] ss:$24 sps:$4 sm:$0xff]  }
 0x286   : > { %4435 = vmatpush1.bf16.msra.mxu1 %v6315_v26  ;;  %4395 = vmatprep.subr.bf16.mxu0 %v6320_v59  ;;  %v6381_v26 = vld [vmem:[#allocation7 + $0x6a0] ss:$24 sps:$4 sm:$0xff]   ;;  %v6386_v59 = vld [vmem:[#allocation7 + $0x3d4] ss:$24 sps:$4 sm:$0xff]  }
 0x287   : > { %4436 = vmatprep.subr.bf16.mxu1 %v6323_v27  ;;  %v6389_v27 = vld [vmem:[#allocation7 + $0x6d4] ss:$24 sps:$4 sm:$0xff]  }
 0x289   : > { %4396 = vmatpush1.bf16.msra.mxu0 %v6318_v32  ;;  %v6392_v32 = vld [vmem:[#allocation7 + $0x404] ss:$24 sps:$4 sm:$0xff]  }
 0x28a   : > { %4437 = vmatpush1.bf16.msra.mxu1 %v6321_v34  ;;  %4397 = vmatprep.subr.bf16.mxu0 %v6326_v36  ;;  %v6395_v34 = vld [vmem:[#allocation7 + $0x704] ss:$24 sps:$4 sm:$0xff]   ;;  %v6390_v36 = vld [vmem:[#allocation7 + $0x400] ss:$24 sps:$4 sm:$0xff]  }
 0x28b   : > { %4438 = vmatprep.subr.bf16.mxu1 %v6329_v37  ;;  %v6393_v37 = vld [vmem:[#allocation7 + $0x700] ss:$24 sps:$4 sm:$0xff]  }
 0x28d   : > { %4398 = vmatpush1.bf16.msra.mxu0 %v6324_v38  ;;  %v6398_v38 = vld [vmem:[#allocation7 + $0x434] ss:$24 sps:$4 sm:$0xff]  }
 0x28e   : > { %4439 = vmatpush1.bf16.msra.mxu1 %v6327_v39  ;;  %4399 = vmatprep.subr.bf16.mxu0 %v6332_v40  ;;  %v6401_v39 = vld [vmem:[#allocation7 + $0x734] ss:$24 sps:$4 sm:$0xff]  }
 0x28f   : > { %4440 = vmatprep.subr.bf16.mxu1 %v6335_v49 }
 0x291   : > { %4400 = vmatpush1.bf16.msra.mxu0 %v6330_v9 }
 0x292   : > { %4441 = vmatpush1.bf16.msra.mxu1 %v6333_v52  ;;  %4401 = vmatprep.subr.bf16.mxu0 %v6338_v41 }
 0x293   : > { %4442 = vmatprep.subr.bf16.mxu1 %v6341_v33 }
 0x295   : > { %4402 = vmatpush1.bf16.msra.mxu0 %v6336_v42 }
 0x296   : > { %4443 = vmatpush1.bf16.msra.mxu1 %v6339_v10  ;;  %4403 = vmatprep.subr.bf16.mxu0 %v6344_v15 }
 0x297   : > { %4444 = vmatprep.subr.bf16.mxu1 %v6347_v44 }
 0x299   : > { %4404 = vmatpush1.bf16.msra.mxu0 %v6342_v45  ;;  %v6396_v45 = vld [vmem:[#allocation7 + $0x430] ss:$24 sps:$4 sm:$0xff]  }
 0x29a   : > { %4445 = vmatpush1.bf16.msra.mxu1 %v6345_v48  ;;  %4405 = vmatprep.subr.bf16.mxu0 %v6350_v50  ;;  %v6399_v48 = vld [vmem:[#allocation7 + $0x730] ss:$24 sps:$4 sm:$0xff]  }
 0x29b   : > { %4446 = vmatprep.subr.bf16.mxu1 %v6353_v51  ;;  %v6407_v51 = vld [vmem:[#allocation7 + $0x764] ss:$24 sps:$4 sm:$0xff]  }
 0x29d   : > { %4406 = vmatpush1.bf16.msra.mxu0 %v6348_v54  ;;  %v6402_v54 = vld [vmem:[#allocation7 + $0x460] ss:$24 sps:$4 sm:$0xff]  }
 0x29e   : > { %4447 = vmatpush1.bf16.msra.mxu1 %v6351_v55  ;;  %4407 = vmatprep.subr.bf16.mxu0 %v6356_v17  ;;  %v6413_v55 = vld [vmem:[#allocation7 + $0x794] ss:$24 sps:$4 sm:$0xff]   ;;  %v6408_v17 = vld [vmem:[#allocation7 + $0x490] ss:$24 sps:$4 sm:$0xff]  }
 0x29f   : > { %4448 = vmatprep.subr.bf16.mxu1 %v6359_v58  ;;  %v6411_v58 = vld [vmem:[#allocation7 + $0x790] ss:$24 sps:$4 sm:$0xff]  }
 0x2a1   : > { %4408 = vmatpush1.bf16.msra.mxu0 %v6354_v60  ;;  %v6416_v60 = vld [vmem:[#allocation7 + $0x4c4] ss:$24 sps:$4 sm:$0xff]  }
 0x2a2   : > { %4449 = vmatpush1.bf16.msra.mxu1 %v6357_v61  ;;  %4459 = vmatprep.subr.bf16.mxu0 %v6362_v62  ;;  %v6419_v61 = vld [vmem:[#allocation7 + $0x7c4] ss:$24 sps:$4 sm:$0xff]   ;;  %v6414_v62 = vld [vmem:[#allocation7 + $0x4c0] ss:$24 sps:$4 sm:$0xff]  }
 0x2a3   : > { %4500 = vmatprep.subr.bf16.mxu1 %v6365_v1  ;;  %v6417_v1 = vld [vmem:[#allocation7 + $0x7c0] ss:$24 sps:$4 sm:$0xff]  }
 0x2a4   : > { %4410 = vmatmul.mubr.bf16.vlgmr.msra.gmra.mrb[28].mxu0 %v7050_v0 }
 0x2a5   : > { %4451 = vmatmul.mubr.bf16.vlgmr.msra.gmra.mrb[28].mxu1 %v7026_v43  ;;  %4460 = vmatpush1.bf16.msra.mxu0 %v6360_v2  ;;  %v6383_v43 = vld [vmem:[#allocation7 + $0x6a4] ss:$24 sps:$4 sm:$0xff]   ;;  %v6422_v2 = vld [vmem:[#allocation7 + $0x4f4] ss:$24 sps:$4 sm:$0xff]  }
 0x2a6   : > { %4501 = vmatpush1.bf16.msra.mxu1 %v6363_v3  ;;  %4461 = vmatprep.subr.bf16.mxu0 %v6368_v4  ;;  %v6425_v3 = vld [vmem:[#allocation7 + $0x7f4] ss:$24 sps:$4 sm:$0xff]   ;;  %v6420_v4 = vld [vmem:[#allocation7 + $0x4f0] ss:$24 sps:$4 sm:$0xff]  }
 0x2a7   : > { %4502 = vmatprep.subr.bf16.mxu1 %v6371_v6  ;;  %4491 = vmatprep.mubr.bf16.mxu0 %v7028_v46  ;;  %v6384_v46 = vld [vmem:[#allocation7 + $0x3d0] ss:$24 sps:$4 sm:$0xff]  }
 0x2a8   : > { %4532 = vmatprep.mubr.bf16.mxu1 %v7030_v47  ;;  %v6387_v47 = vld [vmem:[#allocation7 + $0x6d0] ss:$24 sps:$4 sm:$0xff]  }
 0x2a9   : > { %4462 = vmatpush1.bf16.msra.mxu0 %v6366_v7  ;;  %v6423_v6 = vld [vmem:[#allocation7 + $0x7f0] ss:$24 sps:$4 sm:$0xff]   ;;  %v6428_v7 = vld [vmem:[#allocation7 + $0x524] ss:$24 sps:$4 sm:$0xff]  }
 0x2aa   : > { %4503 = vmatpush1.bf16.msra.mxu1 %v6369_v11  ;;  %4463 = vmatprep.subr.bf16.mxu0 %v6374_v12  ;;  %v6431_v11 = vld [vmem:[#allocation7 + $0x824] ss:$24 sps:$4 sm:$0xff]   ;;  %v6426_v12 = vld [vmem:[#allocation7 + $0x520] ss:$24 sps:$4 sm:$0xff]  }
 0x2ab   : > { %4504 = vmatprep.subr.bf16.mxu1 %v6377_v22  ;;  %v6429_v22 = vld [vmem:[#allocation7 + $0x820] ss:$24 sps:$4 sm:$0xff]  }
 0x2ad   : > { %4464 = vmatpush1.bf16.msra.mxu0 %v6372_v23  ;;  %v6434_v23 = vld [vmem:[#allocation7 + $0x554] ss:$24 sps:$4 sm:$0xff]  }
 0x2ae   : > { %4505 = vmatpush1.bf16.msra.mxu1 %v6375_v56  ;;  %4465 = vmatprep.subr.bf16.mxu0 %v6380_v24  ;;  %v6437_v56 = vld [vmem:[#allocation7 + $0x854] ss:$24 sps:$4 sm:$0xff]   ;;  %v6432_v24 = vld [vmem:[#allocation7 + $0x550] ss:$24 sps:$4 sm:$0xff]  }
 0x2af   : > { %4506 = vmatprep.subr.bf16.mxu1 %v6383_v43  ;;  %v6435_v43 = vld [vmem:[#allocation7 + $0x850] ss:$24 sps:$4 sm:$0xff]  }
 0x2b1   : > { %4466 = vmatpush1.bf16.msra.mxu0 %v6378_v25  ;;  %v6440_v25 = vld [vmem:[#allocation7 + $0x584] ss:$24 sps:$4 sm:$0xff]  }
 0x2b2   : > { %4507 = vmatpush1.bf16.msra.mxu1 %v6381_v26  ;;  %4467 = vmatprep.subr.bf16.mxu0 %v6386_v59  ;;  %v6443_v26 = vld [vmem:[#allocation7 + $0x884] ss:$24 sps:$4 sm:$0xff]   ;;  %v6438_v59 = vld [vmem:[#allocation7 + $0x580] ss:$24 sps:$4 sm:$0xff]  }
 0x2b3   : > { %4508 = vmatprep.subr.bf16.mxu1 %v6389_v27  ;;  %v6441_v27 = vld [vmem:[#allocation7 + $0x880] ss:$24 sps:$4 sm:$0xff]  }
 0x2b5   : > { %4468 = vmatpush1.bf16.msra.mxu0 %v6384_v46  ;;  %v6446_v46 = vld [vmem:[#allocation7 + $0x5b4] ss:$24 sps:$4 sm:$0xff]  }
 0x2b6   : > { %4509 = vmatpush1.bf16.msra.mxu1 %v6387_v47  ;;  %4469 = vmatprep.subr.bf16.mxu0 %v6392_v32  ;;  %v6449_v47 = vld [vmem:[#allocation7 + $0x8b4] ss:$24 sps:$4 sm:$0xff]   ;;  %v6444_v32 = vld [vmem:[#allocation7 + $0x5b0] ss:$24 sps:$4 sm:$0xff]  }
 0x2b7   : > { %4510 = vmatprep.subr.bf16.mxu1 %v6395_v34  ;;  %v2725_v40 = vpop.f32.mrb[16].mxu0  ;;  %v6447_v34 = vld [vmem:[#allocation7 + $0x8b0] ss:$24 sps:$4 sm:$0xff]  }
 0x2b8   : > { %v4206_v49 = vpop.f32.mrb[16].mxu1  ;;  %v7111_v9 = vadd.f32 %v2725_v40, %v7066_v53  ;;  %v2727_v41 = vpop.f32.mrb[17].mxu0 }
 0x2b9   : > { %v7114_v52 = vadd.f32 %v4206_v49, %v7039_v13  ;;  %v4208_v33 = vpop.f32.mrb[17].mxu1  ;;  %v7117_v42 = vadd.f32 %v2727_v41, %v7068_v57  ;;  %v2729_v15 = vpop.f32.mrb[18].mxu0  ;;  %4470 = vmatpush1.bf16.msra.mxu0 %v6390_v36  ;;  %v6404_v13 = vld [vmem:[#allocation7 + $0x464] ss:$24 sps:$4 sm:$0xff]   ;;  %v6405_v57 = vld [vmem:[#allocation7 + $0x760] ss:$24 sps:$4 sm:$0xff]  }
 0x2ba   : > { %v7120_v10 = vadd.f32 %v4208_v33, %v7044_v16  ;;  %v4210_v44 = vpop.f32.mrb[18].mxu1  ;;  %4511 = vmatpush1.bf16.msra.mxu1 %v6393_v37  ;;  %v2730_v50 = vpop.f32.mrb[19].mxu0  ;;  %4471 = vmatprep.subr.bf16.mxu0 %v6398_v38  ;;  %v6410_v16 = vld [vmem:[#allocation7 + $0x494] ss:$24 sps:$4 sm:$0xff]   ;;  %v6452_v36 = vld [vmem:[#allocation7 + $0x5e4] ss:$24 sps:$4 sm:$0xff]  }
 0x2bb   : > { %v4211_v53 = vpop.f32.mrb[19].mxu1  ;;  %4512 = vmatprep.subr.bf16.mxu1 %v6401_v39  ;;  %v6455_v37 = vld [vmem:[#allocation7 + $0x8e4] ss:$24 sps:$4 sm:$0xff]   ;;  %v6450_v38 = vld [vmem:[#allocation7 + $0x5e0] ss:$24 sps:$4 sm:$0xff]  }
 0x2bc   : > { %v6453_v39 = vld [vmem:[#allocation7 + $0x8e0] ss:$24 sps:$4 sm:$0xff]  }
 0x2bd   : > { %4472 = vmatpush1.bf16.msra.mxu0 %v6396_v45 }
 0x2be   : > { %4513 = vmatpush1.bf16.msra.mxu1 %v6399_v48  ;;  %4473 = vmatprep.subr.bf16.mxu0 %v6404_v13 }
 0x2bf   : > { %4514 = vmatprep.subr.bf16.mxu1 %v6407_v51 }
 0x2c1   : > { %4474 = vmatpush1.bf16.msra.mxu0 %v6402_v54  ;;  %v321_v54 = vld [vmem:[#allocation10 + $0x8] sm:$0x77] }
 0x2c2   : > { %4515 = vmatpush1.bf16.msra.mxu1 %v6405_v57  ;;  %4475 = vmatprep.subr.bf16.mxu0 %v6410_v16  ;;  %v4654_v57 = vrot.slane %v321_v54, %v7073_v14  ;;  %v4718_v16 = vrot.slane %v321_v54, %v7082_v20 }
 0x2c3   : > { %4516 = vmatprep.subr.bf16.mxu1 %v6413_v55 }
 0x2c5   : > { %4476 = vmatpush1.bf16.msra.mxu0 %v6408_v17  ;;  %v7140_v17 = vrot.slane %v4718_v16, %v7079_v19 }
 0x2c6   : > { %4517 = vmatpush1.bf16.msra.mxu1 %v6411_v58  ;;  %4477 = vmatprep.subr.bf16.mxu0 %v6416_v60 }
 0x2c7   : > { %4518 = vmatprep.subr.bf16.mxu1 %v6419_v61 }
 0x2c9   : > { %4478 = vmatpush1.bf16.msra.mxu0 %v6414_v62 }
 0x2ca   : > { %4519 = vmatpush1.bf16.msra.mxu1 %v6417_v1  ;;  %4479 = vmatprep.subr.bf16.mxu0 %v6422_v2 }
 0x2cb   : > { %4520 = vmatprep.subr.bf16.mxu1 %v6425_v3 }
 0x2cd   : > { %4480 = vmatpush1.bf16.msra.mxu0 %v6420_v4 }
 0x2ce   : > { %4521 = vmatpush1.bf16.msra.mxu1 %v6423_v6  ;;  %4481 = vmatprep.subr.bf16.mxu0 %v6428_v7 }
 0x2cf   : > { %4522 = vmatprep.subr.bf16.mxu1 %v6431_v11 }
 0x2d1   : > { %4482 = vmatpush1.bf16.msra.mxu0 %v6426_v12 }
 0x2d2   : > { %4523 = vmatpush1.bf16.msra.mxu1 %v6429_v22  ;;  %4483 = vmatprep.subr.bf16.mxu0 %v6434_v23  ;;  %v322_v22 = vld [vmem:[#allocation10 + $0x10] sm:$0x77] }
 0x2d3   : > { %4524 = vmatprep.subr.bf16.mxu1 %v6437_v56  ;;  %v4662_v23 = vrot.slane %v322_v22, %v7073_v14  ;;  %v4666_v56 = vrot.slane %v322_v22, %v7076_v18 }
 0x2d5   : > { %4484 = vmatpush1.bf16.msra.mxu0 %v6432_v24  ;;  %v4722_v24 = vrot.slane %v322_v22, %v7079_v19 }
 0x2d6   : > { %4525 = vmatpush1.bf16.msra.mxu1 %v6435_v43  ;;  %4485 = vmatprep.subr.bf16.mxu0 %v6440_v25  ;;  %v4726_v43 = vrot.slane %v322_v22, %v7082_v20 }
 0x2d7   : > { %4526 = vmatprep.subr.bf16.mxu1 %v6443_v26  ;;  %v7155_v25 = vrot.slane %v4722_v24, %v7079_v19 }
 0x2d8   : > { %v7158_v26 = vrot.slane %v4726_v43, %v7079_v19 }
 0x2d9   : > { %4486 = vmatpush1.bf16.msra.mxu0 %v6438_v59 }
 0x2da   : > { %4527 = vmatpush1.bf16.msra.mxu1 %v6441_v27  ;;  %4487 = vmatprep.subr.bf16.mxu0 %v6446_v46 }
 0x2db   : > { %4528 = vmatprep.subr.bf16.mxu1 %v6449_v47 }
 0x2dd   : > { %4488 = vmatpush1.bf16.msra.mxu0 %v6444_v32 }
 0x2de   : > { %4529 = vmatpush1.bf16.msra.mxu1 %v6447_v34  ;;  %4489 = vmatprep.subr.bf16.mxu0 %v6452_v36 }
 0x2df   : > { %4530 = vmatprep.subr.bf16.mxu1 %v6455_v37 }
 0x2e1   : > { %4490 = vmatpush1.bf16.msra.mxu0 %v6450_v38 }
 0x2e2   : > { %4531 = vmatpush1.bf16.msra.mxu1 %v6453_v39  ;;  %v4546_v39 = vsub.s32 0, %v7070_v5 }
 0x2e4   : > { %4492 = vmatmul.mubr.bf16.vlgmr.msra.gmra.mrb[32].mxu0 %v7048_v63  ;;  %v4658_v63 = vrot.slane %v321_v54, %v7076_v18 }
 0x2e5   : > { %4533 = vmatmul.mubr.bf16.vlgmr.msra.gmra.mrb[32].mxu1 %v7050_v0  ;;  %v4714_v0 = vrot.slane %v321_v54, %v7079_v19 }
 0x2e7   : > { %v7137_v55 = vrot.slane %v4714_v0, %v7079_v19  ;;  %v4547_v19 = vrot.slane %v7084_v21, %v4546_v39 }
 0x2f7   : > { %v4247_v40 = vpop.f32.mrb[20].mxu0 }
 0x2f8   : > { %v4288_v49 = vpop.f32.mrb[20].mxu1  ;;  %v4248_v41 = vadd.f32 %v4247_v40, %v7114_v52  ;;  %v4249_v33 = vpop.f32.mrb[21].mxu0  ;;  %v7131_v52 = vrot.slane %v4654_v57, %v7073_v14  ;;  %v4550_v40 = vsub.s32 4, %v7070_v5 }
 0x2f9   : > { %v4290_v15 = vpop.f32.mrb[21].mxu1  ;;  %v4250_v44 = vadd.f32 %v4249_v33, %v7120_v10  ;;  %v4251_v45 = vpop.f32.mrb[22].mxu0  ;;  %v7134_v10 = vrot.slane %v4658_v63, %v7073_v14  ;;  %v4577_v33 = vrot.slane %v4547_v19, %v4546_v39  ;;  %v4563_v63 = vrot.slane %v322_v22, %v4546_v39 }
 0x2fa   : > { %v4292_v48 = vpop.f32.mrb[22].mxu1  ;;  %v4289_v50 = vadd.f32 %v4288_v49, %v4248_v41  ;;  %v4252_v53 = vpop.f32.mrb[23].mxu0  ;;  %v4551_v49 = vrot.slane %v7084_v21, %v4550_v40  ;;  %v4555_v41 = vrot.slane %v321_v54, %v4546_v39  ;;  %v4567_v0 = vrot.slane %v322_v22, %v4550_v40 }
 0x2fb   : > { %v4293_v13 = vpop.f32.mrb[23].mxu1  ;;  %v4291_v51 = vadd.f32 %v4290_v15, %v4250_v44  ;;  %v4559_v44 = vrot.slane %v321_v54, %v4550_v40 }
 0x2fc   : > { %v4585_v15 = vrot.slane %v4555_v41, %v4546_v39  ;;  %v4598_v45 = vadd.f32 %v4577_v33, %v4289_v50  ;;  %v4597_v50 = vrot.slane %v4567_v0, %v4546_v39 }
 0x2fd   : > { %v4589_v53 = vrot.slane %v4559_v44, %v4546_v39 }
 0x2fe   : > { %v4611_v13 = vmul.f32 %v4598_v45, %v4598_v45 }
 0x337   : > { %v4329_v58 = vpop.f32.mrb[24].mxu0 }
 0x338   : > { %v4370_v60 = vpop.f32.mrb[24].mxu1  ;;  %v4330_v61 = vadd.f32 %v4329_v58, %v7058_v8  ;;  %v4331_v62 = vpop.f32.mrb[25].mxu0  ;;  %v7149_v8 = vrot.slane %v4662_v23, %v7073_v14 }
 0x339   : > { %v4372_v1 = vpop.f32.mrb[25].mxu1  ;;  %v4332_v2 = vadd.f32 %v4331_v62, %v7060_v35  ;;  %v4333_v3 = vpop.f32.mrb[26].mxu0  ;;  %v7152_v35 = vrot.slane %v4666_v56, %v7073_v14 }
 0x33a   : > { %v4374_v4 = vpop.f32.mrb[26].mxu1  ;;  %v4371_v6 = vadd.f32 %v4370_v60, %v4330_v61  ;;  %v4334_v7 = vpop.f32.mrb[27].mxu0 }
 0x33b   : > { %v4375_v11 = vpop.f32.mrb[27].mxu1  ;;  %v4373_v12 = vadd.f32 %v4372_v1, %v4332_v2  ;;  %v4593_v1 = vrot.slane %v4563_v63, %v4546_v39 }
 0x377   : > { %v4411_v59 = vpop.f32.mrb[28].mxu0 }
 0x378   : > { %v4452_v27 = vpop.f32.mrb[28].mxu1  ;;  %v4412_v46 = vadd.f32 %v4411_v59, %v4371_v6  ;;  %v4413_v47 = vpop.f32.mrb[29].mxu0 }
 0x379   : > { %v4453_v18 = vadd.f32 %v4452_v27, %v7111_v9  ;;  %v4454_v32 = vpop.f32.mrb[29].mxu1  ;;  %v4414_v20 = vadd.f32 %v4413_v47, %v4373_v12  ;;  %v4415_v36 = vpop.f32.mrb[30].mxu0  ;;  %v4581_v9 = vrot.slane %v4551_v49, %v4546_v39 }
 0x37a   : > { %v4455_v34 = vadd.f32 %v4454_v32, %v7117_v42  ;;  %v4456_v37 = vpop.f32.mrb[30].mxu1  ;;  %v4416_v14 = vpop.f32.mrb[31].mxu0  ;;  %v4600_v42 = vadd.f32 %v4585_v15, %v4412_v46 }
 0x37b   : > { %v4457_v38 = vpop.f32.mrb[31].mxu1  ;;  %v4599_v48 = vadd.f32 %v4581_v9, %v4291_v51  ;;  %v4601_v5 = vadd.f32 %v4589_v53, %v4414_v20 }
 0x37c   : > { %v4613_v58 = vmul.f32 %v4600_v42, %v4600_v42 }
 0x37d   : > { %v4612_v57 = vmul.f32 %v4599_v48, %v4599_v48  ;;  %v4604_v16 = vadd.f32 %v4599_v48, %v4598_v45  ;;  %v4614_v7 = vmul.f32 %v4601_v5, %v4601_v5 }
 0x37f   : > { %v4617_v62 = vadd.f32 %v4612_v57, %v4611_v13  ;;  %v4605_v4 = vadd.f32 %v4604_v16, %v4600_v42 }
 0x381   : > { %v4618_v22 = vadd.f32 %v4617_v62, %v4613_v58  ;;  %v4606_v43 = vadd.f32 %v4605_v4, %v4601_v5  ;;  %v6460_v4 = vld [vmem:[%s6966_s10 + $0x10] sm:$0xff] }
 0x3b7   : > { %v4493_v60 = vpop.f32.mrb[32].mxu0 }
 0x3b8   : > { %v4534_v61 = vpop.f32.mrb[32].mxu1  ;;  %v4494_v21 = vadd.f32 %v4493_v60, %v4453_v18  ;;  %v4495_v2 = vpop.f32.mrb[33].mxu0  ;;  %v4619_v18 = vadd.f32 %v4618_v22, %v4614_v7 }
 0x3b9   : > { %v4536_v3 = vpop.f32.mrb[33].mxu1  ;;  %v4496_v54 = vadd.f32 %v4495_v2, %v4455_v34  ;;  %v4497_v51 = vpop.f32.mrb[34].mxu0  ;;  %v6459_v2 = vld [vmem:[%s6966_s10 + $0x8] sm:$0xff] }
 0x3ba   : > { %v4538_v6 = vpop.f32.mrb[34].mxu1  ;;  %v4535_v11 = vadd.f32 %v4534_v61, %v4494_v21  ;;  %v4498_v12 = vpop.f32.mrb[35].mxu0  ;;  %v6463_v51 = vld [vmem:[%s6966_s10 + $0x28] sm:$0xff] }
 0x3bb   : > { %v4539_v23 = vpop.f32.mrb[35].mxu1  ;;  %v4537_v56 = vadd.f32 %v4536_v3, %v4496_v54  ;;  %v6461_v54 = vld [vmem:[%s6966_s10 + $0x18] sm:$0xff] }
 0x3bc   : > { %v4602_v24 = vadd.f32 %v4593_v1, %v4535_v11 }
 0x3bd   : > { %v4603_v59 = vadd.f32 %v4597_v50, %v4537_v56 }
 0x3be   : > { %v4607_v27 = vadd.f32 %v4606_v43, %v4602_v24  ;;  %v4615_v46 = vmul.f32 %v4602_v24, %v4602_v24 }
 0x3bf   : > { %v4616_v32 = vmul.f32 %v4603_v59, %v4603_v59 }
 0x3c0   : > { %v4608_v47 = vadd.f32 %v4607_v27, %v4603_v59  ;;  %v4620_v20 = vadd.f32 %v4619_v18, %v4615_v46 }
 0x3c2   : > { %4609 = vadd.xlane.f32.xlu0 %v4608_v47  ;;  %v4621_v34 = vadd.f32 %v4620_v20, %v4616_v32 }
 0x3c6   : > { %4622 = vadd.xlane.f32.xlu0 %v4621_v34 }
 0x44f   : > { %v4610_v36 = vpop.xlane.xlu0 %4609 }
 0x450   : > { %v4624_v37 = vmul.f32 0.0013020834, %v4610_v36 }
 0x452   : > { %v4626_v38 = vmul.f32 %v4624_v37, %v4624_v37  ;;  %v4631_v41 = vsub.f32 %v4598_v45, %v4624_v37  ;;  %v4632_v33 = vsub.f32 %v4599_v48, %v4624_v37  ;;  %v4633_v9 = vsub.f32 %v4600_v42, %v4624_v37 }
 0x453   : > { %v4623_v14 = vpop.xlane.xlu0 %4622  ;;  %v4634_v15 = vsub.f32 %v4601_v5, %v4624_v37  ;;  %v4635_v53 = vsub.f32 %v4602_v24, %v4624_v37  ;;  %v4636_v13 = vsub.f32 %v4603_v59, %v4624_v37 }
 0x454   : > { %v4625_v39 = vmul.f32 0.0013020834, %v4623_v14 }
 0x456   : > { %v4627_v40 = vsub.f32 %v4625_v39, %v4626_v38 }
 0x458   : > { %v4628_v19 = vmax.f32 %v4627_v40, 0.0 }
 0x45a   : > { %v4629_v49 = vadd.f32 1e-05, %v4628_v19 }
 0x45c   : > { %6456 = vrsqrt.f32 %v4629_v49 }
 0x466   : > { %v6457_v44 = vpop.eup %6456 }
 0x467   : > { %v4637_v57 = vmul.f32 %v6457_v44, %v4631_v41  ;;  %v4638_v63 = vmul.f32 %v6457_v44, %v4632_v33  ;;  %v4639_v0 = vmul.f32 %v6457_v44, %v4633_v9  ;;  %v4640_v16 = vmul.f32 %v6457_v44, %v4634_v15 }
 0x468   : > { %v4641_v58 = vmul.f32 %v6457_v44, %v4635_v53  ;;  %v4642_v60 = vmul.f32 %v6457_v44, %v4636_v13 }
 0x469   : > { %v4697_v61 = vmul.f32 %v7095_v28, %v4637_v57  ;;  %v4698_v62 = vmul.f32 %v7098_v29, %v4638_v63  ;;  %v4699_v45 = vmul.f32 %v7131_v52, %v4639_v0  ;;  %v4700_v48 = vmul.f32 %v7134_v10, %v4640_v16 }
 0x46a   : > { %v4701_v42 = vmul.f32 %v7149_v8, %v4641_v58  ;;  %v4702_v5 = vmul.f32 %v7152_v35, %v4642_v60  ;;  %v6458_v8 = vld [vmem:[%s6966_s10] sm:$0xff] }
 0x46b   : > { %v4757_v21 = vadd.f32 %v7101_v30, %v4697_v61  ;;  %v4758_v1 = vadd.f32 %v7104_v31, %v4698_v62  ;;  %v4759_v28 = vadd.f32 %v7137_v55, %v4699_v45  ;;  %v4760_v29 = vadd.f32 %v7140_v17, %v4700_v48  ;;  %v6462_v55 = vld [vmem:[%s6966_s10 + $0x20] sm:$0xff] }
 0x46c   : > { %v4761_v52 = vadd.f32 %v7155_v25, %v4701_v42  ;;  %v4762_v10 = vadd.f32 %v7158_v26, %v4702_v5 }
 0x46d   : > { %v4763_v35 = vadd.f32 %v6458_v8, %v4757_v21  ;;  %v4764_v3 = vadd.f32 %v6459_v2, %v4758_v1  ;;  %v4765_v30 = vadd.f32 %v6460_v4, %v4759_v28  ;;  %v4766_v31 = vadd.f32 %v6461_v54, %v4760_v29 }
 0x46e   : > { %v4767_v50 = vadd.f32 %v6462_v55, %v4761_v52  ;;  %v4768_v17 = vadd.f32 %v6463_v51, %v4762_v10 }
 0x46f   : > { %4769 = vst [vmem:[%s319_s15] sm:$0xff] %v4763_v35  ;;  %4770 = vst [vmem:[%s319_s15 + $0x8] sm:$0xff] %v4764_v3 }
 0x470   : > { %4771 = vst [vmem:[%s319_s15 + $0x10] sm:$0xff] %v4765_v30  ;;  %4772 = vst [vmem:[%s319_s15 + $0x18] sm:$0xff] %v4766_v31 }
 0x471   : > { %4773 = vst [vmem:[%s319_s15 + $0x20] sm:$0xff] %v4767_v50  ;;  %4774 = vst [vmem:[%s319_s15 + $0x28] sm:$0xff] %v4768_v17 }
 0x472   : > { %6621 = shalt.err (!%p6618_p10)
}
 0x473   : > { %s6622_s8 = scalar_lea.hbm %s7189_s27, 768  ;;  %s6626_s26 = scalar_lea.hbm %s7238_s5, 1536 }
 0x474   : > { %p6623_p13 = scmp.ne.s32.totalorder %s7189_s27, %s6622_s8  ;;  %p6627_p9 = scmp.lt.u32.totalorder %s7189_s27, %s7238_s5 }
 0x475   : > { %p6628_p3 = scmp.lt.u32.totalorder %s6626_s26, %s6622_s8  ;;  %p6630_p12 = scmp.lt.u32.totalorder %s6622_s8, %s7189_s27 }
 0x476   : > { %p6624_p5 = pnand %p6623_p13, %p7259_p2 }
 0x477   : > { %p6629_p7 = por %p6628_p3, %p6627_p9 }
 0x478   : > { %p6625_p11 = pneg %p6624_p5 }
 0x479   : > { %p6631_p1 = por %p6630_p12, %p6629_p7 }
 0x47b   : > { %p6632_p4 = pnand %p6631_p1, %p6625_p11 }
 0x47d   : > { %6635 = shalt.err (!%p6632_p4)
}
 0x47e   : > { %5524 = dma.vmem_to_hbm [thread:$0]  (%p7259_p2), %s7191_s29, 768, %s7189_s27, %s4776_s7  }
 0x47f PF: > { %s4802_s24 = sand.u32 1, %s6674_s18   ;;  %p7260_p0 = scmp.ne.s32.totalorder %s7245_s25, 0 }
 0x480   : > { %p7261_p8 = scmp.ge.s32.totalorder %s6686_s21, 2  ;;  %s4803_s15 = scalar_lea.sflag [#allocation4], %s4802_s24 }
 0x482   : > { %p5544_p6 = pnand %p7261_p8, %p7260_p0 }
 0x484   : > { %6669 = dma.done.wait (!%p5544_p6), %s4803_s15, 768  }
 0x485   : > { %6671 = vsyncadd (!%p5544_p6), %s4803_s15, 4294966528  ;;  %p22_p10 = scmp.ge.s32.totalorder %s6857_s14, 4   ;;  %s7262_s18 = smov %s6678_s19 }
 0x486   : > { %s7263_s19 = smov %s6682_s20  ;;  %s7264_s20 = smov %s6867_s28 }
 0x487   : > { %s7265_s21 = smov %s6857_s14  ;;  %24 = sbr.rel (!%p22_p10) target bundleno = 8 (0x8), region = 110 }
 0x48e   :  { %4808 = vsyncpa [#allocation3], 1 }
 0x48f   :  { %4810 = vsyncpa [#allocation3 + $0x1], 1 }
 0x490   :  { %4811 = vsyncpa [#allocation6], 1 }
 0x491   :  { %4813 = vsyncpa [#allocation6 + $0x1], 1 }
 0x492   :  { %4814 = vsyncpa [#allocation9], 1 }
 0x493   :  { %4815 = vsyncpa [#allocation4], 1 }
 0x494   :  { %4817 = vsyncpa [#allocation4 + $0x1], 1 }

</bundles_post_ra>
